<compile_context>
chip_gen: v7x
topology: tpu7x:2x2x1
jax: 0.10.0
libtpu: 0.0.40
codegen_flags: <defaults>
</compile_context>

<pallas_src>
import numpy as np
import jax
import jax.numpy as jnp
from jax.experimental import pallas as pl
from jax.experimental.pallas import tpu as pltpu

EPS = 1e-5                 # nn.InstanceNorm2d default eps (affine=False, biased var)
DILATIONS = (1, 2, 4)


def _make_masks(H, W):
    """(27, H*W) f32 zero-padding border masks.

    Row (b*9 + kh*3 + kw) is the mask for dilation DILATIONS[b], tap (kh, kw): it zeroes
    every destination pixel whose source (i + d*(kh-1), j + d*(kw-1)) is out of bounds,
    which turns a circular lane-roll into a zero-padded shift.
    """
    i = np.arange(H).reshape(H, 1)
    j = np.arange(W).reshape(1, W)
    rows = []
    for d in DILATIONS:
        for kh in range(3):
            for kw in range(3):
                dh, dw = d * (kh - 1), d * (kw - 1)
                ok = (i + dh >= 0) & (i + dh < H) & (j + dw >= 0) & (j + dw < W)
                rows.append(ok.reshape(H * W))
    return jnp.asarray(np.stack(rows).astype(np.float32))


def _pack_weights(weights, C):
    """Stacked im2col weights (6, C, 9*C) bf16; index 2*b + conv (conv 0 = first conv).

    Column order (kh*3 + kw)*C + ci matches the tap-major / channel-minor slab rows
    built in-kernel.
    """
    mats = []
    for d in DILATIONS:
        for w in weights[d]:                                   # torch layout (Cout, Cin, 3, 3)
            w = np.asarray(w, dtype=np.float32)
            mats.append(np.transpose(w, (0, 2, 3, 1)).reshape(C, 9 * C))
    return jnp.asarray(np.stack(mats), dtype=jnp.bfloat16)


def _make_kernel(C, H, W):
    HW = H * W
    inv_hw = 1.0 / HW

    def conv3x3(z, w_bf16, m_ref, b, d, slab_ref):
        """Dilated 3x3 conv (zero padding d) of z: (C, HW) f32, as a single MXU dot.

        Each tap is a circular lane-roll of z; the precomputed border mask zeroes every
        position whose source is out of bounds (reproducing the conv's zero padding).
        Masked taps are stacked along sublanes into the (9C, HW) bf16 scratch slab and
        contracted against the host-prepacked (C, 9C) bf16 im2col weight.
        """
        for kh in range(3):
            for kw in range(3):
                t = kh * 3 + kw
                off = d * (kh - 1) * W + d * (kw - 1)
                if off == 0:
                    tap = z                                    # center tap: mask is all-ones
                else:
                    mrow = m_ref[pl.ds(b * 9 + t, 1), :]       # (1, HW) row, sublane-broadcast
                    tap = pltpu.roll(z, shift=(-off) % HW, axis=1) * mrow
                slab_ref[pl.ds(t * C, C), :] = tap.astype(jnp.bfloat16)
        # single (C, 9C) @ (9C, HW) bf16 dot, f32 accumulation
        return jnp.dot(w_bf16, slab_ref[...], preferred_element_type=jnp.float32)

    def inst_norm(y):
        # nn.InstanceNorm2d defaults: per-channel over H*W, biased variance, eps=1e-5,
        # affine=False.  Fused sum / sum-of-squares; variance clamped >= 0.
        s1 = jnp.sum(y, axis=1, keepdims=True)
        s2 = jnp.sum(y * y, axis=1, keepdims=True)
        mean = s1 * inv_hw
        var = jnp.maximum(s2 * inv_hw - mean * mean, 0.0)
        return (y - mean) * jax.lax.rsqrt(var + EPS)

    def kernel(x_ref, m_ref, w_ref, o_ref, slab_ref):
        x = x_ref[0]                                           # (C, HW) f32; also the residual
        branch_sum = jnp.zeros((C, HW), jnp.float32)
        for b, d in enumerate(DILATIONS):
            wa = w_ref[2 * b]                                  # (C, 9C) bf16
            wb = w_ref[2 * b + 1]
            y = conv3x3(x, wa, m_ref, b, d, slab_ref)          # conv -> IN -> ReLU
            y = jnp.maximum(inst_norm(y), 0.0)
            y = conv3x3(y, wb, m_ref, b, d, slab_ref)          # conv -> IN
            branch_sum = branch_sum + inst_norm(y)             # incremental branch sum
        # average of branches + residual, final ReLU; full-width (256-lane) store
        o_ref[0] = jnp.maximum(branch_sum * (1.0 / 3.0) + x, 0.0)

    return kernel


def basic_block_forward(x, weights):
    """x: (N, C, H, W) f32.  weights: {d: (wa, wb)}, each torch-layout (Cout, Cin, 3, 3)."""
    N, C, H, W = x.shape
    HW = H * W
    # Lane-dense layout: each image is a (C, H*W) slab, last dim on the 128-lane axis.
    # NOTE: for large N one would lane-stack several images per grid step (masks tiled
    # to nps*HW, per-image segment sums in inst_norm); at N=2 the two "parallel" grid
    # steps already keep both v7x TensorCores busy, so nothing is folded here.
    x_flat = x.reshape(N, C, HW).astype(jnp.float32)
    masks = _make_masks(H, W)                                  # (27, HW) packed 2-D
    w_all = _pack_weights(weights, C)                          # (6, C, 9*C) bf16

    kernel = _make_kernel(C, H, W)
    out = pl.pallas_call(
        kernel,
        out_shape=jax.ShapeDtypeStruct((N, C, HW), jnp.float32),
        grid=(N,),
        in_specs=[pl.BlockSpec((1, C, HW), lambda n: (n, 0, 0)),
                  pl.BlockSpec((len(DILATIONS) * 9, HW), lambda n: (0, 0)),
                  pl.BlockSpec((2 * len(DILATIONS), C, 9 * C), lambda n: (0, 0, 0))],
        out_specs=pl.BlockSpec((1, C, HW), lambda n: (n, 0, 0)),
        scratch_shapes=[pltpu.VMEM((9 * C, HW), jnp.bfloat16)],   # im2col slab
        compiler_params=pltpu.CompilerParams(dimension_semantics=("parallel",)),
    )(x_flat, masks, w_all)
    return out.reshape(N, C, H, W)


def _jax_reference(x, weights):
    def inorm(y):
        m = jnp.mean(y, axis=(2, 3), keepdims=True)
        v = jnp.mean((y - m) ** 2, axis=(2, 3), keepdims=True)
        return (y - m) / jnp.sqrt(v + EPS)

    def conv(y, w, d):
        return jax.lax.conv_general_dilated(
            y, w, window_strides=(1, 1), padding=[(d, d), (d, d)],
            rhs_dilation=(d, d), dimension_numbers=('NCHW', 'OIHW', 'NCHW'),
            precision=jax.lax.Precision.HIGHEST)

    branches = []
    for d in DILATIONS:
        wa, wb = weights[d]
        y = jax.nn.relu(inorm(conv(x, wa, d)))
        y = inorm(conv(y, wb, d))
        branches.append(y)
    out = (branches[0] + branches[1] + branches[2]) / 3.0 + x
    return jax.nn.relu(out)


if __name__ == "__main__":
    key = jax.random.PRNGKey(0)
    N, C, H, W = 2, 4, 16, 16
    keys = jax.random.split(key, 7)
    x = jax.random.normal(keys[0], (N, C, H, W), dtype=jnp.float32)

    scale = 1.0 / (C * 9) ** 0.5
    weights = {}
    for i, d in enumerate(DILATIONS):
        wa = jax.random.normal(keys[1 + 2 * i], (C, C, 3, 3), jnp.float32) * scale
        wb = jax.random.normal(keys[2 + 2 * i], (C, C, 3, 3), jnp.float32) * scale
        weights[d] = (wa, wb)

    out = jax.block_until_ready(basic_block_forward(x, weights))
    ref = _jax_reference(x, weights)
    assert out.shape == (N, C, H, W)
    # bf16 MXU operands (applied per perf review) add ~1e-3 rms / up to ~1e-2 max
    # rounding relative to the f32 reference; 2e-2 still flags structural/semantic
    # bugs, which produce O(0.1+) errors.
    err = float(jnp.max(jnp.abs(out - ref)))
    assert bool(jnp.allclose(out, ref, atol=2e-2, rtol=2e-2)), f"mismatch vs reference (max abs err {err})"
    print("KERNEL_OK")
</pallas_src>

<mosaic_0001>
module attributes {stable_mosaic.version = 11 : i64} {
  func.func @kernel(%arg0: i32, %arg1: memref<1x4x256xf32, #tpu.memory_space<vmem>>, %arg2: memref<27x256xf32, #tpu.memory_space<vmem>>, %arg3: memref<6x4x36xbf16, #tpu.memory_space<vmem>>, %arg4: memref<1x4x256xf32, #tpu.memory_space<vmem>>, %arg5: memref<36x256xbf16, #tpu.memory_space<vmem>>) attributes {dimension_semantics = [#tpu.dimension_semantics<parallel>], iteration_bounds = array<i64: 2>, scalar_prefetch = 0 : i64, scratch_operands = 1 : i64, tpu.core_type = #tpu.core_type<tc>, window_params = [{transform_indices = @transform_0, window_bounds = array<i64: 1, 4, 256>}, {pipeline_mode = #tpu.pipeline_mode<synchronous>, transform_indices = @transform_1, window_bounds = array<i64: 27, 256>}, {pipeline_mode = #tpu.pipeline_mode<synchronous>, transform_indices = @transform_2, window_bounds = array<i64: 6, 4, 36>}, {transform_indices = @transform_3, window_bounds = array<i64: 1, 4, 256>}]} {
    %c0 = arith.constant 0 : index
    %c0_0 = arith.constant 0 : index
    %c0_1 = arith.constant 0 : index
    %0 = vector.load %arg1[%c0, %c0_0, %c0_1] : memref<1x4x256xf32, #tpu.memory_space<vmem>>, vector<1x4x256xf32>
    %1 = vector.shape_cast %0 : vector<1x4x256xf32> to vector<4x256xf32>
    %cst = arith.constant 0.000000e+00 : f32
    %2 = vector.broadcast %cst : f32 to vector<4x256xf32>
    %c0_2 = arith.constant 0 : index
    %c0_3 = arith.constant 0 : index
    %c0_4 = arith.constant 0 : index
    %3 = vector.load %arg3[%c0_2, %c0_3, %c0_4] : memref<6x4x36xbf16, #tpu.memory_space<vmem>>, vector<1x4x36xbf16>
    %4 = vector.shape_cast %3 : vector<1x4x36xbf16> to vector<4x36xbf16>
    %c1 = arith.constant 1 : index
    %c0_5 = arith.constant 0 : index
    %c0_6 = arith.constant 0 : index
    %5 = vector.load %arg3[%c1, %c0_5, %c0_6] : memref<6x4x36xbf16, #tpu.memory_space<vmem>>, vector<1x4x36xbf16>
    %6 = vector.shape_cast %5 : vector<1x4x36xbf16> to vector<4x36xbf16>
    %c0_7 = arith.constant 0 : index
    %c0_8 = arith.constant 0 : index
    %7 = vector.load %arg2[%c0_7, %c0_8] : memref<27x256xf32, #tpu.memory_space<vmem>>, vector<1x256xf32>
    %c17_i32 = arith.constant 17 : i32
    %8 = tpu.dynamic_rotate %1 by %c17_i32 dim 1 : vector<4x256xf32>, i32 -> vector<4x256xf32>
    %9 = vector.broadcast %7 : vector<1x256xf32> to vector<4x256xf32>
    %10 = arith.mulf %8, %9 : vector<4x256xf32>
    %11 = arith.truncf %10 : vector<4x256xf32> to vector<4x256xbf16>
    %c0_9 = arith.constant 0 : index
    %c0_10 = arith.constant 0 : index
    %12 = vector.load %arg5[%c0_9, %c0_10] : memref<36x256xbf16, #tpu.memory_space<vmem>>, vector<4x256xbf16>
    tpu.vector_store %arg5[%c0_9, %c0_10], %11 {strides = array<i32>} : memref<36x256xbf16, #tpu.memory_space<vmem>>, vector<4x256xbf16>,
    %c1_11 = arith.constant 1 : index
    %c0_12 = arith.constant 0 : index
    %13 = vector.load %arg2[%c1_11, %c0_12] : memref<27x256xf32, #tpu.memory_space<vmem>>, vector<1x256xf32>
    %c16_i32 = arith.constant 16 : i32
    %14 = tpu.dynamic_rotate %1 by %c16_i32 dim 1 : vector<4x256xf32>, i32 -> vector<4x256xf32>
    %15 = vector.broadcast %13 : vector<1x256xf32> to vector<4x256xf32>
    %16 = arith.mulf %14, %15 : vector<4x256xf32>
    %17 = arith.truncf %16 : vector<4x256xf32> to vector<4x256xbf16>
    %c4 = arith.constant 4 : index
    %c0_13 = arith.constant 0 : index
    %18 = vector.load %arg5[%c4, %c0_13] : memref<36x256xbf16, #tpu.memory_space<vmem>>, vector<4x256xbf16>
    tpu.vector_store %arg5[%c4, %c0_13], %17 {strides = array<i32>} : memref<36x256xbf16, #tpu.memory_space<vmem>>, vector<4x256xbf16>,
    %c2 = arith.constant 2 : index
    %c0_14 = arith.constant 0 : index
    %19 = vector.load %arg2[%c2, %c0_14] : memref<27x256xf32, #tpu.memory_space<vmem>>, vector<1x256xf32>
    %c15_i32 = arith.constant 15 : i32
    %20 = tpu.dynamic_rotate %1 by %c15_i32 dim 1 : vector<4x256xf32>, i32 -> vector<4x256xf32>
    %21 = vector.broadcast %19 : vector<1x256xf32> to vector<4x256xf32>
    %22 = arith.mulf %20, %21 : vector<4x256xf32>
    %23 = arith.truncf %22 : vector<4x256xf32> to vector<4x256xbf16>
    %c8 = arith.constant 8 : index
    %c0_15 = arith.constant 0 : index
    %24 = vector.load %arg5[%c8, %c0_15] : memref<36x256xbf16, #tpu.memory_space<vmem>>, vector<4x256xbf16>
    tpu.vector_store %arg5[%c8, %c0_15], %23 {strides = array<i32>} : memref<36x256xbf16, #tpu.memory_space<vmem>>, vector<4x256xbf16>,
    %c3 = arith.constant 3 : index
    %c0_16 = arith.constant 0 : index
    %25 = vector.load %arg2[%c3, %c0_16] : memref<27x256xf32, #tpu.memory_space<vmem>>, vector<1x256xf32>
    %c1_i32 = arith.constant 1 : i32
    %26 = tpu.dynamic_rotate %1 by %c1_i32 dim 1 : vector<4x256xf32>, i32 -> vector<4x256xf32>
    %27 = vector.broadcast %25 : vector<1x256xf32> to vector<4x256xf32>
    %28 = arith.mulf %26, %27 : vector<4x256xf32>
    %29 = arith.truncf %28 : vector<4x256xf32> to vector<4x256xbf16>
    %c12 = arith.constant 12 : index
    %c0_17 = arith.constant 0 : index
    %30 = vector.load %arg5[%c12, %c0_17] : memref<36x256xbf16, #tpu.memory_space<vmem>>, vector<4x256xbf16>
    tpu.vector_store %arg5[%c12, %c0_17], %29 {strides = array<i32>} : memref<36x256xbf16, #tpu.memory_space<vmem>>, vector<4x256xbf16>,
    %31 = arith.truncf %1 : vector<4x256xf32> to vector<4x256xbf16>
    %c16 = arith.constant 16 : index
    %c0_18 = arith.constant 0 : index
    %32 = vector.load %arg5[%c16, %c0_18] : memref<36x256xbf16, #tpu.memory_space<vmem>>, vector<4x256xbf16>
    tpu.vector_store %arg5[%c16, %c0_18], %31 {strides = array<i32>} : memref<36x256xbf16, #tpu.memory_space<vmem>>, vector<4x256xbf16>,
    %c5 = arith.constant 5 : index
    %c0_19 = arith.constant 0 : index
    %33 = vector.load %arg2[%c5, %c0_19] : memref<27x256xf32, #tpu.memory_space<vmem>>, vector<1x256xf32>
    %c255_i32 = arith.constant 255 : i32
    %34 = tpu.dynamic_rotate %1 by %c255_i32 dim 1 : vector<4x256xf32>, i32 -> vector<4x256xf32>
    %35 = vector.broadcast %33 : vector<1x256xf32> to vector<4x256xf32>
    %36 = arith.mulf %34, %35 : vector<4x256xf32>
    %37 = arith.truncf %36 : vector<4x256xf32> to vector<4x256xbf16>
    %c20 = arith.constant 20 : index
    %c0_20 = arith.constant 0 : index
    %38 = vector.load %arg5[%c20, %c0_20] : memref<36x256xbf16, #tpu.memory_space<vmem>>, vector<4x256xbf16>
    tpu.vector_store %arg5[%c20, %c0_20], %37 {strides = array<i32>} : memref<36x256xbf16, #tpu.memory_space<vmem>>, vector<4x256xbf16>,
    %c6 = arith.constant 6 : index
    %c0_21 = arith.constant 0 : index
    %39 = vector.load %arg2[%c6, %c0_21] : memref<27x256xf32, #tpu.memory_space<vmem>>, vector<1x256xf32>
    %c241_i32 = arith.constant 241 : i32
    %40 = tpu.dynamic_rotate %1 by %c241_i32 dim 1 : vector<4x256xf32>, i32 -> vector<4x256xf32>
    %41 = vector.broadcast %39 : vector<1x256xf32> to vector<4x256xf32>
    %42 = arith.mulf %40, %41 : vector<4x256xf32>
    %43 = arith.truncf %42 : vector<4x256xf32> to vector<4x256xbf16>
    %c24 = arith.constant 24 : index
    %c0_22 = arith.constant 0 : index
    %44 = vector.load %arg5[%c24, %c0_22] : memref<36x256xbf16, #tpu.memory_space<vmem>>, vector<4x256xbf16>
    tpu.vector_store %arg5[%c24, %c0_22], %43 {strides = array<i32>} : memref<36x256xbf16, #tpu.memory_space<vmem>>, vector<4x256xbf16>,
    %c7 = arith.constant 7 : index
    %c0_23 = arith.constant 0 : index
    %45 = vector.load %arg2[%c7, %c0_23] : memref<27x256xf32, #tpu.memory_space<vmem>>, vector<1x256xf32>
    %c240_i32 = arith.constant 240 : i32
    %46 = tpu.dynamic_rotate %1 by %c240_i32 dim 1 : vector<4x256xf32>, i32 -> vector<4x256xf32>
    %47 = vector.broadcast %45 : vector<1x256xf32> to vector<4x256xf32>
    %48 = arith.mulf %46, %47 : vector<4x256xf32>
    %49 = arith.truncf %48 : vector<4x256xf32> to vector<4x256xbf16>
    %c28 = arith.constant 28 : index
    %c0_24 = arith.constant 0 : index
    %50 = vector.load %arg5[%c28, %c0_24] : memref<36x256xbf16, #tpu.memory_space<vmem>>, vector<4x256xbf16>
    tpu.vector_store %arg5[%c28, %c0_24], %49 {strides = array<i32>} : memref<36x256xbf16, #tpu.memory_space<vmem>>, vector<4x256xbf16>,
    %c8_25 = arith.constant 8 : index
    %c0_26 = arith.constant 0 : index
    %51 = vector.load %arg2[%c8_25, %c0_26] : memref<27x256xf32, #tpu.memory_space<vmem>>, vector<1x256xf32>
    %c239_i32 = arith.constant 239 : i32
    %52 = tpu.dynamic_rotate %1 by %c239_i32 dim 1 : vector<4x256xf32>, i32 -> vector<4x256xf32>
    %53 = vector.broadcast %51 : vector<1x256xf32> to vector<4x256xf32>
    %54 = arith.mulf %52, %53 : vector<4x256xf32>
    %55 = arith.truncf %54 : vector<4x256xf32> to vector<4x256xbf16>
    %c32 = arith.constant 32 : index
    %c0_27 = arith.constant 0 : index
    %56 = vector.load %arg5[%c32, %c0_27] : memref<36x256xbf16, #tpu.memory_space<vmem>>, vector<4x256xbf16>
    tpu.vector_store %arg5[%c32, %c0_27], %55 {strides = array<i32>} : memref<36x256xbf16, #tpu.memory_space<vmem>>, vector<4x256xbf16>,
    %c0_28 = arith.constant 0 : index
    %c0_29 = arith.constant 0 : index
    %57 = vector.load %arg5[%c0_28, %c0_29] : memref<36x256xbf16, #tpu.memory_space<vmem>>, vector<36x256xbf16>
    %cst_30 = arith.constant dense<0.000000e+00> : vector<4x256xf32>
    %58 = tpu.matmul %4, %57, %cst_30 {dimension_numbers = #tpu.dot_dimension_numbers<[1], [0], [0], [1], [0, 0, 1, 1], [], []>} : vector<4x36xbf16>, vector<36x256xbf16>, vector<4x256xf32> -> vector<4x256xf32>
    %cst_31 = arith.constant dense<0.000000e+00> : vector<4xf32>
    %59 = vector.multi_reduction <add>, %58, %cst_31 [1] : vector<4x256xf32> to vector<4xf32>
    %60 = vector.shape_cast %59 : vector<4xf32> to vector<4x1xf32>
    %61 = arith.mulf %58, %58 : vector<4x256xf32>
    %cst_32 = arith.constant dense<0.000000e+00> : vector<4xf32>
    %62 = vector.multi_reduction <add>, %61, %cst_32 [1] : vector<4x256xf32> to vector<4xf32>
    %63 = vector.shape_cast %62 : vector<4xf32> to vector<4x1xf32>
    %cst_33 = arith.constant 3.906250e-03 : f32
    %64 = vector.broadcast %cst_33 : f32 to vector<4x1xf32>
    %65 = arith.mulf %60, %64 : vector<4x1xf32>
    %cst_34 = arith.constant 3.906250e-03 : f32
    %66 = vector.broadcast %cst_34 : f32 to vector<4x1xf32>
    %67 = arith.mulf %63, %66 : vector<4x1xf32>
    %68 = arith.mulf %65, %65 : vector<4x1xf32>
    %69 = arith.subf %67, %68 : vector<4x1xf32>
    %cst_35 = arith.constant 0.000000e+00 : f32
    %70 = vector.broadcast %cst_35 : f32 to vector<4x1xf32>
    %71 = arith.maximumf %69, %70 : vector<4x1xf32>
    %72 = vector.broadcast %65 : vector<4x1xf32> to vector<4x256xf32>
    %73 = arith.subf %58, %72 : vector<4x256xf32>
    %cst_36 = arith.constant 9.99999974E-6 : f32
    %74 = vector.broadcast %cst_36 : f32 to vector<4x1xf32>
    %75 = arith.addf %71, %74 : vector<4x1xf32>
    %76 = math.rsqrt %75 : vector<4x1xf32>
    %77 = vector.broadcast %76 : vector<4x1xf32> to vector<4x256xf32>
    %78 = arith.mulf %73, %77 : vector<4x256xf32>
    %cst_37 = arith.constant 0.000000e+00 : f32
    %79 = vector.broadcast %cst_37 : f32 to vector<4x256xf32>
    %80 = arith.maximumf %78, %79 : vector<4x256xf32>
    %c0_38 = arith.constant 0 : index
    %c0_39 = arith.constant 0 : index
    %81 = vector.load %arg2[%c0_38, %c0_39] : memref<27x256xf32, #tpu.memory_space<vmem>>, vector<1x256xf32>
    %c17_i32_40 = arith.constant 17 : i32
    %82 = tpu.dynamic_rotate %80 by %c17_i32_40 dim 1 : vector<4x256xf32>, i32 -> vector<4x256xf32>
    %83 = vector.broadcast %81 : vector<1x256xf32> to vector<4x256xf32>
    %84 = arith.mulf %82, %83 : vector<4x256xf32>
    %85 = arith.truncf %84 : vector<4x256xf32> to vector<4x256xbf16>
    %c0_41 = arith.constant 0 : index
    %c0_42 = arith.constant 0 : index
    %86 = vector.load %arg5[%c0_41, %c0_42] : memref<36x256xbf16, #tpu.memory_space<vmem>>, vector<4x256xbf16>
    tpu.vector_store %arg5[%c0_41, %c0_42], %85 {strides = array<i32>} : memref<36x256xbf16, #tpu.memory_space<vmem>>, vector<4x256xbf16>,
    %c1_43 = arith.constant 1 : index
    %c0_44 = arith.constant 0 : index
    %87 = vector.load %arg2[%c1_43, %c0_44] : memref<27x256xf32, #tpu.memory_space<vmem>>, vector<1x256xf32>
    %c16_i32_45 = arith.constant 16 : i32
    %88 = tpu.dynamic_rotate %80 by %c16_i32_45 dim 1 : vector<4x256xf32>, i32 -> vector<4x256xf32>
    %89 = vector.broadcast %87 : vector<1x256xf32> to vector<4x256xf32>
    %90 = arith.mulf %88, %89 : vector<4x256xf32>
    %91 = arith.truncf %90 : vector<4x256xf32> to vector<4x256xbf16>
    %c4_46 = arith.constant 4 : index
    %c0_47 = arith.constant 0 : index
    %92 = vector.load %arg5[%c4_46, %c0_47] : memref<36x256xbf16, #tpu.memory_space<vmem>>, vector<4x256xbf16>
    tpu.vector_store %arg5[%c4_46, %c0_47], %91 {strides = array<i32>} : memref<36x256xbf16, #tpu.memory_space<vmem>>, vector<4x256xbf16>,
    %c2_48 = arith.constant 2 : index
    %c0_49 = arith.constant 0 : index
    %93 = vector.load %arg2[%c2_48, %c0_49] : memref<27x256xf32, #tpu.memory_space<vmem>>, vector<1x256xf32>
    %c15_i32_50 = arith.constant 15 : i32
    %94 = tpu.dynamic_rotate %80 by %c15_i32_50 dim 1 : vector<4x256xf32>, i32 -> vector<4x256xf32>
    %95 = vector.broadcast %93 : vector<1x256xf32> to vector<4x256xf32>
    %96 = arith.mulf %94, %95 : vector<4x256xf32>
    %97 = arith.truncf %96 : vector<4x256xf32> to vector<4x256xbf16>
    %c8_51 = arith.constant 8 : index
    %c0_52 = arith.constant 0 : index
    %98 = vector.load %arg5[%c8_51, %c0_52] : memref<36x256xbf16, #tpu.memory_space<vmem>>, vector<4x256xbf16>
    tpu.vector_store %arg5[%c8_51, %c0_52], %97 {strides = array<i32>} : memref<36x256xbf16, #tpu.memory_space<vmem>>, vector<4x256xbf16>,
    %c3_53 = arith.constant 3 : index
    %c0_54 = arith.constant 0 : index
    %99 = vector.load %arg2[%c3_53, %c0_54] : memref<27x256xf32, #tpu.memory_space<vmem>>, vector<1x256xf32>
    %c1_i32_55 = arith.constant 1 : i32
    %100 = tpu.dynamic_rotate %80 by %c1_i32_55 dim 1 : vector<4x256xf32>, i32 -> vector<4x256xf32>
    %101 = vector.broadcast %99 : vector<1x256xf32> to vector<4x256xf32>
    %102 = arith.mulf %100, %101 : vector<4x256xf32>
    %103 = arith.truncf %102 : vector<4x256xf32> to vector<4x256xbf16>
    %c12_56 = arith.constant 12 : index
    %c0_57 = arith.constant 0 : index
    %104 = vector.load %arg5[%c12_56, %c0_57] : memref<36x256xbf16, #tpu.memory_space<vmem>>, vector<4x256xbf16>
    tpu.vector_store %arg5[%c12_56, %c0_57], %103 {strides = array<i32>} : memref<36x256xbf16, #tpu.memory_space<vmem>>, vector<4x256xbf16>,
    %105 = arith.truncf %80 : vector<4x256xf32> to vector<4x256xbf16>
    %c16_58 = arith.constant 16 : index
    %c0_59 = arith.constant 0 : index
    %106 = vector.load %arg5[%c16_58, %c0_59] : memref<36x256xbf16, #tpu.memory_space<vmem>>, vector<4x256xbf16>
    tpu.vector_store %arg5[%c16_58, %c0_59], %105 {strides = array<i32>} : memref<36x256xbf16, #tpu.memory_space<vmem>>, vector<4x256xbf16>,
    %c5_60 = arith.constant 5 : index
    %c0_61 = arith.constant 0 : index
    %107 = vector.load %arg2[%c5_60, %c0_61] : memref<27x256xf32, #tpu.memory_space<vmem>>, vector<1x256xf32>
    %c255_i32_62 = arith.constant 255 : i32
    %108 = tpu.dynamic_rotate %80 by %c255_i32_62 dim 1 : vector<4x256xf32>, i32 -> vector<4x256xf32>
    %109 = vector.broadcast %107 : vector<1x256xf32> to vector<4x256xf32>
    %110 = arith.mulf %108, %109 : vector<4x256xf32>
    %111 = arith.truncf %110 : vector<4x256xf32> to vector<4x256xbf16>
    %c20_63 = arith.constant 20 : index
    %c0_64 = arith.constant 0 : index
    %112 = vector.load %arg5[%c20_63, %c0_64] : memref<36x256xbf16, #tpu.memory_space<vmem>>, vector<4x256xbf16>
    tpu.vector_store %arg5[%c20_63, %c0_64], %111 {strides = array<i32>} : memref<36x256xbf16, #tpu.memory_space<vmem>>, vector<4x256xbf16>,
    %c6_65 = arith.constant 6 : index
    %c0_66 = arith.constant 0 : index
    %113 = vector.load %arg2[%c6_65, %c0_66] : memref<27x256xf32, #tpu.memory_space<vmem>>, vector<1x256xf32>
    %c241_i32_67 = arith.constant 241 : i32
    %114 = tpu.dynamic_rotate %80 by %c241_i32_67 dim 1 : vector<4x256xf32>, i32 -> vector<4x256xf32>
    %115 = vector.broadcast %113 : vector<1x256xf32> to vector<4x256xf32>
    %116 = arith.mulf %114, %115 : vector<4x256xf32>
    %117 = arith.truncf %116 : vector<4x256xf32> to vector<4x256xbf16>
    %c24_68 = arith.constant 24 : index
    %c0_69 = arith.constant 0 : index
    %118 = vector.load %arg5[%c24_68, %c0_69] : memref<36x256xbf16, #tpu.memory_space<vmem>>, vector<4x256xbf16>
    tpu.vector_store %arg5[%c24_68, %c0_69], %117 {strides = array<i32>} : memref<36x256xbf16, #tpu.memory_space<vmem>>, vector<4x256xbf16>,
    %c7_70 = arith.constant 7 : index
    %c0_71 = arith.constant 0 : index
    %119 = vector.load %arg2[%c7_70, %c0_71] : memref<27x256xf32, #tpu.memory_space<vmem>>, vector<1x256xf32>
    %c240_i32_72 = arith.constant 240 : i32
    %120 = tpu.dynamic_rotate %80 by %c240_i32_72 dim 1 : vector<4x256xf32>, i32 -> vector<4x256xf32>
    %121 = vector.broadcast %119 : vector<1x256xf32> to vector<4x256xf32>
    %122 = arith.mulf %120, %121 : vector<4x256xf32>
    %123 = arith.truncf %122 : vector<4x256xf32> to vector<4x256xbf16>
    %c28_73 = arith.constant 28 : index
    %c0_74 = arith.constant 0 : index
    %124 = vector.load %arg5[%c28_73, %c0_74] : memref<36x256xbf16, #tpu.memory_space<vmem>>, vector<4x256xbf16>
    tpu.vector_store %arg5[%c28_73, %c0_74], %123 {strides = array<i32>} : memref<36x256xbf16, #tpu.memory_space<vmem>>, vector<4x256xbf16>,
    %c8_75 = arith.constant 8 : index
    %c0_76 = arith.constant 0 : index
    %125 = vector.load %arg2[%c8_75, %c0_76] : memref<27x256xf32, #tpu.memory_space<vmem>>, vector<1x256xf32>
    %c239_i32_77 = arith.constant 239 : i32
    %126 = tpu.dynamic_rotate %80 by %c239_i32_77 dim 1 : vector<4x256xf32>, i32 -> vector<4x256xf32>
    %127 = vector.broadcast %125 : vector<1x256xf32> to vector<4x256xf32>
    %128 = arith.mulf %126, %127 : vector<4x256xf32>
    %129 = arith.truncf %128 : vector<4x256xf32> to vector<4x256xbf16>
    %c32_78 = arith.constant 32 : index
    %c0_79 = arith.constant 0 : index
    %130 = vector.load %arg5[%c32_78, %c0_79] : memref<36x256xbf16, #tpu.memory_space<vmem>>, vector<4x256xbf16>
    tpu.vector_store %arg5[%c32_78, %c0_79], %129 {strides = array<i32>} : memref<36x256xbf16, #tpu.memory_space<vmem>>, vector<4x256xbf16>,
    %c0_80 = arith.constant 0 : index
    %c0_81 = arith.constant 0 : index
    %131 = vector.load %arg5[%c0_80, %c0_81] : memref<36x256xbf16, #tpu.memory_space<vmem>>, vector<36x256xbf16>
    %cst_82 = arith.constant dense<0.000000e+00> : vector<4x256xf32>
    %132 = tpu.matmul %6, %131, %cst_82 {dimension_numbers = #tpu.dot_dimension_numbers<[1], [0], [0], [1], [0, 0, 1, 1], [], []>} : vector<4x36xbf16>, vector<36x256xbf16>, vector<4x256xf32> -> vector<4x256xf32>
    %cst_83 = arith.constant dense<0.000000e+00> : vector<4xf32>
    %133 = vector.multi_reduction <add>, %132, %cst_83 [1] : vector<4x256xf32> to vector<4xf32>
    %134 = vector.shape_cast %133 : vector<4xf32> to vector<4x1xf32>
    %135 = arith.mulf %132, %132 : vector<4x256xf32>
    %cst_84 = arith.constant dense<0.000000e+00> : vector<4xf32>
    %136 = vector.multi_reduction <add>, %135, %cst_84 [1] : vector<4x256xf32> to vector<4xf32>
    %137 = vector.shape_cast %136 : vector<4xf32> to vector<4x1xf32>
    %cst_85 = arith.constant 3.906250e-03 : f32
    %138 = vector.broadcast %cst_85 : f32 to vector<4x1xf32>
    %139 = arith.mulf %134, %138 : vector<4x1xf32>
    %cst_86 = arith.constant 3.906250e-03 : f32
    %140 = vector.broadcast %cst_86 : f32 to vector<4x1xf32>
    %141 = arith.mulf %137, %140 : vector<4x1xf32>
    %142 = arith.mulf %139, %139 : vector<4x1xf32>
    %143 = arith.subf %141, %142 : vector<4x1xf32>
    %cst_87 = arith.constant 0.000000e+00 : f32
    %144 = vector.broadcast %cst_87 : f32 to vector<4x1xf32>
    %145 = arith.maximumf %143, %144 : vector<4x1xf32>
    %146 = vector.broadcast %139 : vector<4x1xf32> to vector<4x256xf32>
    %147 = arith.subf %132, %146 : vector<4x256xf32>
    %cst_88 = arith.constant 9.99999974E-6 : f32
    %148 = vector.broadcast %cst_88 : f32 to vector<4x1xf32>
    %149 = arith.addf %145, %148 : vector<4x1xf32>
    %150 = math.rsqrt %149 : vector<4x1xf32>
    %151 = vector.broadcast %150 : vector<4x1xf32> to vector<4x256xf32>
    %152 = arith.mulf %147, %151 : vector<4x256xf32>
    %153 = arith.addf %2, %152 : vector<4x256xf32>
    %c2_89 = arith.constant 2 : index
    %c0_90 = arith.constant 0 : index
    %c0_91 = arith.constant 0 : index
    %154 = vector.load %arg3[%c2_89, %c0_90, %c0_91] : memref<6x4x36xbf16, #tpu.memory_space<vmem>>, vector<1x4x36xbf16>
    %155 = vector.shape_cast %154 : vector<1x4x36xbf16> to vector<4x36xbf16>
    %c3_92 = arith.constant 3 : index
    %c0_93 = arith.constant 0 : index
    %c0_94 = arith.constant 0 : index
    %156 = vector.load %arg3[%c3_92, %c0_93, %c0_94] : memref<6x4x36xbf16, #tpu.memory_space<vmem>>, vector<1x4x36xbf16>
    %157 = vector.shape_cast %156 : vector<1x4x36xbf16> to vector<4x36xbf16>
    %c9 = arith.constant 9 : index
    %c0_95 = arith.constant 0 : index
    %158 = vector.load %arg2[%c9, %c0_95] : memref<27x256xf32, #tpu.memory_space<vmem>>, vector<1x256xf32>
    %c34_i32 = arith.constant 34 : i32
    %159 = tpu.dynamic_rotate %1 by %c34_i32 dim 1 : vector<4x256xf32>, i32 -> vector<4x256xf32>
    %160 = vector.broadcast %158 : vector<1x256xf32> to vector<4x256xf32>
    %161 = arith.mulf %159, %160 : vector<4x256xf32>
    %162 = arith.truncf %161 : vector<4x256xf32> to vector<4x256xbf16>
    %c0_96 = arith.constant 0 : index
    %c0_97 = arith.constant 0 : index
    %163 = vector.load %arg5[%c0_96, %c0_97] : memref<36x256xbf16, #tpu.memory_space<vmem>>, vector<4x256xbf16>
    tpu.vector_store %arg5[%c0_96, %c0_97], %162 {strides = array<i32>} : memref<36x256xbf16, #tpu.memory_space<vmem>>, vector<4x256xbf16>,
    %c10 = arith.constant 10 : index
    %c0_98 = arith.constant 0 : index
    %164 = vector.load %arg2[%c10, %c0_98] : memref<27x256xf32, #tpu.memory_space<vmem>>, vector<1x256xf32>
    %c32_i32 = arith.constant 32 : i32
    %165 = tpu.dynamic_rotate %1 by %c32_i32 dim 1 : vector<4x256xf32>, i32 -> vector<4x256xf32>
    %166 = vector.broadcast %164 : vector<1x256xf32> to vector<4x256xf32>
    %167 = arith.mulf %165, %166 : vector<4x256xf32>
    %168 = arith.truncf %167 : vector<4x256xf32> to vector<4x256xbf16>
    %c4_99 = arith.constant 4 : index
    %c0_100 = arith.constant 0 : index
    %169 = vector.load %arg5[%c4_99, %c0_100] : memref<36x256xbf16, #tpu.memory_space<vmem>>, vector<4x256xbf16>
    tpu.vector_store %arg5[%c4_99, %c0_100], %168 {strides = array<i32>} : memref<36x256xbf16, #tpu.memory_space<vmem>>, vector<4x256xbf16>,
    %c11 = arith.constant 11 : index
    %c0_101 = arith.constant 0 : index
    %170 = vector.load %arg2[%c11, %c0_101] : memref<27x256xf32, #tpu.memory_space<vmem>>, vector<1x256xf32>
    %c30_i32 = arith.constant 30 : i32
    %171 = tpu.dynamic_rotate %1 by %c30_i32 dim 1 : vector<4x256xf32>, i32 -> vector<4x256xf32>
    %172 = vector.broadcast %170 : vector<1x256xf32> to vector<4x256xf32>
    %173 = arith.mulf %171, %172 : vector<4x256xf32>
    %174 = arith.truncf %173 : vector<4x256xf32> to vector<4x256xbf16>
    %c8_102 = arith.constant 8 : index
    %c0_103 = arith.constant 0 : index
    %175 = vector.load %arg5[%c8_102, %c0_103] : memref<36x256xbf16, #tpu.memory_space<vmem>>, vector<4x256xbf16>
    tpu.vector_store %arg5[%c8_102, %c0_103], %174 {strides = array<i32>} : memref<36x256xbf16, #tpu.memory_space<vmem>>, vector<4x256xbf16>,
    %c12_104 = arith.constant 12 : index
    %c0_105 = arith.constant 0 : index
    %176 = vector.load %arg2[%c12_104, %c0_105] : memref<27x256xf32, #tpu.memory_space<vmem>>, vector<1x256xf32>
    %c2_i32 = arith.constant 2 : i32
    %177 = tpu.dynamic_rotate %1 by %c2_i32 dim 1 : vector<4x256xf32>, i32 -> vector<4x256xf32>
    %178 = vector.broadcast %176 : vector<1x256xf32> to vector<4x256xf32>
    %179 = arith.mulf %177, %178 : vector<4x256xf32>
    %180 = arith.truncf %179 : vector<4x256xf32> to vector<4x256xbf16>
    %c12_106 = arith.constant 12 : index
    %c0_107 = arith.constant 0 : index
    %181 = vector.load %arg5[%c12_106, %c0_107] : memref<36x256xbf16, #tpu.memory_space<vmem>>, vector<4x256xbf16>
    tpu.vector_store %arg5[%c12_106, %c0_107], %180 {strides = array<i32>} : memref<36x256xbf16, #tpu.memory_space<vmem>>, vector<4x256xbf16>,
    %182 = arith.truncf %1 : vector<4x256xf32> to vector<4x256xbf16>
    %c16_108 = arith.constant 16 : index
    %c0_109 = arith.constant 0 : index
    %183 = vector.load %arg5[%c16_108, %c0_109] : memref<36x256xbf16, #tpu.memory_space<vmem>>, vector<4x256xbf16>
    tpu.vector_store %arg5[%c16_108, %c0_109], %182 {strides = array<i32>} : memref<36x256xbf16, #tpu.memory_space<vmem>>, vector<4x256xbf16>,
    %c14 = arith.constant 14 : index
    %c0_110 = arith.constant 0 : index
    %184 = vector.load %arg2[%c14, %c0_110] : memref<27x256xf32, #tpu.memory_space<vmem>>, vector<1x256xf32>
    %c254_i32 = arith.constant 254 : i32
    %185 = tpu.dynamic_rotate %1 by %c254_i32 dim 1 : vector<4x256xf32>, i32 -> vector<4x256xf32>
    %186 = vector.broadcast %184 : vector<1x256xf32> to vector<4x256xf32>
    %187 = arith.mulf %185, %186 : vector<4x256xf32>
    %188 = arith.truncf %187 : vector<4x256xf32> to vector<4x256xbf16>
    %c20_111 = arith.constant 20 : index
    %c0_112 = arith.constant 0 : index
    %189 = vector.load %arg5[%c20_111, %c0_112] : memref<36x256xbf16, #tpu.memory_space<vmem>>, vector<4x256xbf16>
    tpu.vector_store %arg5[%c20_111, %c0_112], %188 {strides = array<i32>} : memref<36x256xbf16, #tpu.memory_space<vmem>>, vector<4x256xbf16>,
    %c15 = arith.constant 15 : index
    %c0_113 = arith.constant 0 : index
    %190 = vector.load %arg2[%c15, %c0_113] : memref<27x256xf32, #tpu.memory_space<vmem>>, vector<1x256xf32>
    %c226_i32 = arith.constant 226 : i32
    %191 = tpu.dynamic_rotate %1 by %c226_i32 dim 1 : vector<4x256xf32>, i32 -> vector<4x256xf32>
    %192 = vector.broadcast %190 : vector<1x256xf32> to vector<4x256xf32>
    %193 = arith.mulf %191, %192 : vector<4x256xf32>
    %194 = arith.truncf %193 : vector<4x256xf32> to vector<4x256xbf16>
    %c24_114 = arith.constant 24 : index
    %c0_115 = arith.constant 0 : index
    %195 = vector.load %arg5[%c24_114, %c0_115] : memref<36x256xbf16, #tpu.memory_space<vmem>>, vector<4x256xbf16>
    tpu.vector_store %arg5[%c24_114, %c0_115], %194 {strides = array<i32>} : memref<36x256xbf16, #tpu.memory_space<vmem>>, vector<4x256xbf16>,
    %c16_116 = arith.constant 16 : index
    %c0_117 = arith.constant 0 : index
    %196 = vector.load %arg2[%c16_116, %c0_117] : memref<27x256xf32, #tpu.memory_space<vmem>>, vector<1x256xf32>
    %c224_i32 = arith.constant 224 : i32
    %197 = tpu.dynamic_rotate %1 by %c224_i32 dim 1 : vector<4x256xf32>, i32 -> vector<4x256xf32>
    %198 = vector.broadcast %196 : vector<1x256xf32> to vector<4x256xf32>
    %199 = arith.mulf %197, %198 : vector<4x256xf32>
    %200 = arith.truncf %199 : vector<4x256xf32> to vector<4x256xbf16>
    %c28_118 = arith.constant 28 : index
    %c0_119 = arith.constant 0 : index
    %201 = vector.load %arg5[%c28_118, %c0_119] : memref<36x256xbf16, #tpu.memory_space<vmem>>, vector<4x256xbf16>
    tpu.vector_store %arg5[%c28_118, %c0_119], %200 {strides = array<i32>} : memref<36x256xbf16, #tpu.memory_space<vmem>>, vector<4x256xbf16>,
    %c17 = arith.constant 17 : index
    %c0_120 = arith.constant 0 : index
    %202 = vector.load %arg2[%c17, %c0_120] : memref<27x256xf32, #tpu.memory_space<vmem>>, vector<1x256xf32>
    %c222_i32 = arith.constant 222 : i32
    %203 = tpu.dynamic_rotate %1 by %c222_i32 dim 1 : vector<4x256xf32>, i32 -> vector<4x256xf32>
    %204 = vector.broadcast %202 : vector<1x256xf32> to vector<4x256xf32>
    %205 = arith.mulf %203, %204 : vector<4x256xf32>
    %206 = arith.truncf %205 : vector<4x256xf32> to vector<4x256xbf16>
    %c32_121 = arith.constant 32 : index
    %c0_122 = arith.constant 0 : index
    %207 = vector.load %arg5[%c32_121, %c0_122] : memref<36x256xbf16, #tpu.memory_space<vmem>>, vector<4x256xbf16>
    tpu.vector_store %arg5[%c32_121, %c0_122], %206 {strides = array<i32>} : memref<36x256xbf16, #tpu.memory_space<vmem>>, vector<4x256xbf16>,
    %c0_123 = arith.constant 0 : index
    %c0_124 = arith.constant 0 : index
    %208 = vector.load %arg5[%c0_123, %c0_124] : memref<36x256xbf16, #tpu.memory_space<vmem>>, vector<36x256xbf16>
    %cst_125 = arith.constant dense<0.000000e+00> : vector<4x256xf32>
    %209 = tpu.matmul %155, %208, %cst_125 {dimension_numbers = #tpu.dot_dimension_numbers<[1], [0], [0], [1], [0, 0, 1, 1], [], []>} : vector<4x36xbf16>, vector<36x256xbf16>, vector<4x256xf32> -> vector<4x256xf32>
    %cst_126 = arith.constant dense<0.000000e+00> : vector<4xf32>
    %210 = vector.multi_reduction <add>, %209, %cst_126 [1] : vector<4x256xf32> to vector<4xf32>
    %211 = vector.shape_cast %210 : vector<4xf32> to vector<4x1xf32>
    %212 = arith.mulf %209, %209 : vector<4x256xf32>
    %cst_127 = arith.constant dense<0.000000e+00> : vector<4xf32>
    %213 = vector.multi_reduction <add>, %212, %cst_127 [1] : vector<4x256xf32> to vector<4xf32>
    %214 = vector.shape_cast %213 : vector<4xf32> to vector<4x1xf32>
    %cst_128 = arith.constant 3.906250e-03 : f32
    %215 = vector.broadcast %cst_128 : f32 to vector<4x1xf32>
    %216 = arith.mulf %211, %215 : vector<4x1xf32>
    %cst_129 = arith.constant 3.906250e-03 : f32
    %217 = vector.broadcast %cst_129 : f32 to vector<4x1xf32>
    %218 = arith.mulf %214, %217 : vector<4x1xf32>
    %219 = arith.mulf %216, %216 : vector<4x1xf32>
    %220 = arith.subf %218, %219 : vector<4x1xf32>
    %cst_130 = arith.constant 0.000000e+00 : f32
    %221 = vector.broadcast %cst_130 : f32 to vector<4x1xf32>
    %222 = arith.maximumf %220, %221 : vector<4x1xf32>
    %223 = vector.broadcast %216 : vector<4x1xf32> to vector<4x256xf32>
    %224 = arith.subf %209, %223 : vector<4x256xf32>
    %cst_131 = arith.constant 9.99999974E-6 : f32
    %225 = vector.broadcast %cst_131 : f32 to vector<4x1xf32>
    %226 = arith.addf %222, %225 : vector<4x1xf32>
    %227 = math.rsqrt %226 : vector<4x1xf32>
    %228 = vector.broadcast %227 : vector<4x1xf32> to vector<4x256xf32>
    %229 = arith.mulf %224, %228 : vector<4x256xf32>
    %cst_132 = arith.constant 0.000000e+00 : f32
    %230 = vector.broadcast %cst_132 : f32 to vector<4x256xf32>
    %231 = arith.maximumf %229, %230 : vector<4x256xf32>
    %c9_133 = arith.constant 9 : index
    %c0_134 = arith.constant 0 : index
    %232 = vector.load %arg2[%c9_133, %c0_134] : memref<27x256xf32, #tpu.memory_space<vmem>>, vector<1x256xf32>
    %c34_i32_135 = arith.constant 34 : i32
    %233 = tpu.dynamic_rotate %231 by %c34_i32_135 dim 1 : vector<4x256xf32>, i32 -> vector<4x256xf32>
    %234 = vector.broadcast %232 : vector<1x256xf32> to vector<4x256xf32>
    %235 = arith.mulf %233, %234 : vector<4x256xf32>
    %236 = arith.truncf %235 : vector<4x256xf32> to vector<4x256xbf16>
    %c0_136 = arith.constant 0 : index
    %c0_137 = arith.constant 0 : index
    %237 = vector.load %arg5[%c0_136, %c0_137] : memref<36x256xbf16, #tpu.memory_space<vmem>>, vector<4x256xbf16>
    tpu.vector_store %arg5[%c0_136, %c0_137], %236 {strides = array<i32>} : memref<36x256xbf16, #tpu.memory_space<vmem>>, vector<4x256xbf16>,
    %c10_138 = arith.constant 10 : index
    %c0_139 = arith.constant 0 : index
    %238 = vector.load %arg2[%c10_138, %c0_139] : memref<27x256xf32, #tpu.memory_space<vmem>>, vector<1x256xf32>
    %c32_i32_140 = arith.constant 32 : i32
    %239 = tpu.dynamic_rotate %231 by %c32_i32_140 dim 1 : vector<4x256xf32>, i32 -> vector<4x256xf32>
    %240 = vector.broadcast %238 : vector<1x256xf32> to vector<4x256xf32>
    %241 = arith.mulf %239, %240 : vector<4x256xf32>
    %242 = arith.truncf %241 : vector<4x256xf32> to vector<4x256xbf16>
    %c4_141 = arith.constant 4 : index
    %c0_142 = arith.constant 0 : index
    %243 = vector.load %arg5[%c4_141, %c0_142] : memref<36x256xbf16, #tpu.memory_space<vmem>>, vector<4x256xbf16>
    tpu.vector_store %arg5[%c4_141, %c0_142], %242 {strides = array<i32>} : memref<36x256xbf16, #tpu.memory_space<vmem>>, vector<4x256xbf16>,
    %c11_143 = arith.constant 11 : index
    %c0_144 = arith.constant 0 : index
    %244 = vector.load %arg2[%c11_143, %c0_144] : memref<27x256xf32, #tpu.memory_space<vmem>>, vector<1x256xf32>
    %c30_i32_145 = arith.constant 30 : i32
    %245 = tpu.dynamic_rotate %231 by %c30_i32_145 dim 1 : vector<4x256xf32>, i32 -> vector<4x256xf32>
    %246 = vector.broadcast %244 : vector<1x256xf32> to vector<4x256xf32>
    %247 = arith.mulf %245, %246 : vector<4x256xf32>
    %248 = arith.truncf %247 : vector<4x256xf32> to vector<4x256xbf16>
    %c8_146 = arith.constant 8 : index
    %c0_147 = arith.constant 0 : index
    %249 = vector.load %arg5[%c8_146, %c0_147] : memref<36x256xbf16, #tpu.memory_space<vmem>>, vector<4x256xbf16>
    tpu.vector_store %arg5[%c8_146, %c0_147], %248 {strides = array<i32>} : memref<36x256xbf16, #tpu.memory_space<vmem>>, vector<4x256xbf16>,
    %c12_148 = arith.constant 12 : index
    %c0_149 = arith.constant 0 : index
    %250 = vector.load %arg2[%c12_148, %c0_149] : memref<27x256xf32, #tpu.memory_space<vmem>>, vector<1x256xf32>
    %c2_i32_150 = arith.constant 2 : i32
    %251 = tpu.dynamic_rotate %231 by %c2_i32_150 dim 1 : vector<4x256xf32>, i32 -> vector<4x256xf32>
    %252 = vector.broadcast %250 : vector<1x256xf32> to vector<4x256xf32>
    %253 = arith.mulf %251, %252 : vector<4x256xf32>
    %254 = arith.truncf %253 : vector<4x256xf32> to vector<4x256xbf16>
    %c12_151 = arith.constant 12 : index
    %c0_152 = arith.constant 0 : index
    %255 = vector.load %arg5[%c12_151, %c0_152] : memref<36x256xbf16, #tpu.memory_space<vmem>>, vector<4x256xbf16>
    tpu.vector_store %arg5[%c12_151, %c0_152], %254 {strides = array<i32>} : memref<36x256xbf16, #tpu.memory_space<vmem>>, vector<4x256xbf16>,
    %256 = arith.truncf %231 : vector<4x256xf32> to vector<4x256xbf16>
    %c16_153 = arith.constant 16 : index
    %c0_154 = arith.constant 0 : index
    %257 = vector.load %arg5[%c16_153, %c0_154] : memref<36x256xbf16, #tpu.memory_space<vmem>>, vector<4x256xbf16>
    tpu.vector_store %arg5[%c16_153, %c0_154], %256 {strides = array<i32>} : memref<36x256xbf16, #tpu.memory_space<vmem>>, vector<4x256xbf16>,
    %c14_155 = arith.constant 14 : index
    %c0_156 = arith.constant 0 : index
    %258 = vector.load %arg2[%c14_155, %c0_156] : memref<27x256xf32, #tpu.memory_space<vmem>>, vector<1x256xf32>
    %c254_i32_157 = arith.constant 254 : i32
    %259 = tpu.dynamic_rotate %231 by %c254_i32_157 dim 1 : vector<4x256xf32>, i32 -> vector<4x256xf32>
    %260 = vector.broadcast %258 : vector<1x256xf32> to vector<4x256xf32>
    %261 = arith.mulf %259, %260 : vector<4x256xf32>
    %262 = arith.truncf %261 : vector<4x256xf32> to vector<4x256xbf16>
    %c20_158 = arith.constant 20 : index
    %c0_159 = arith.constant 0 : index
    %263 = vector.load %arg5[%c20_158, %c0_159] : memref<36x256xbf16, #tpu.memory_space<vmem>>, vector<4x256xbf16>
    tpu.vector_store %arg5[%c20_158, %c0_159], %262 {strides = array<i32>} : memref<36x256xbf16, #tpu.memory_space<vmem>>, vector<4x256xbf16>,
    %c15_160 = arith.constant 15 : index
    %c0_161 = arith.constant 0 : index
    %264 = vector.load %arg2[%c15_160, %c0_161] : memref<27x256xf32, #tpu.memory_space<vmem>>, vector<1x256xf32>
    %c226_i32_162 = arith.constant 226 : i32
    %265 = tpu.dynamic_rotate %231 by %c226_i32_162 dim 1 : vector<4x256xf32>, i32 -> vector<4x256xf32>
    %266 = vector.broadcast %264 : vector<1x256xf32> to vector<4x256xf32>
    %267 = arith.mulf %265, %266 : vector<4x256xf32>
    %268 = arith.truncf %267 : vector<4x256xf32> to vector<4x256xbf16>
    %c24_163 = arith.constant 24 : index
    %c0_164 = arith.constant 0 : index
    %269 = vector.load %arg5[%c24_163, %c0_164] : memref<36x256xbf16, #tpu.memory_space<vmem>>, vector<4x256xbf16>
    tpu.vector_store %arg5[%c24_163, %c0_164], %268 {strides = array<i32>} : memref<36x256xbf16, #tpu.memory_space<vmem>>, vector<4x256xbf16>,
    %c16_165 = arith.constant 16 : index
    %c0_166 = arith.constant 0 : index
    %270 = vector.load %arg2[%c16_165, %c0_166] : memref<27x256xf32, #tpu.memory_space<vmem>>, vector<1x256xf32>
    %c224_i32_167 = arith.constant 224 : i32
    %271 = tpu.dynamic_rotate %231 by %c224_i32_167 dim 1 : vector<4x256xf32>, i32 -> vector<4x256xf32>
    %272 = vector.broadcast %270 : vector<1x256xf32> to vector<4x256xf32>
    %273 = arith.mulf %271, %272 : vector<4x256xf32>
    %274 = arith.truncf %273 : vector<4x256xf32> to vector<4x256xbf16>
    %c28_168 = arith.constant 28 : index
    %c0_169 = arith.constant 0 : index
    %275 = vector.load %arg5[%c28_168, %c0_169] : memref<36x256xbf16, #tpu.memory_space<vmem>>, vector<4x256xbf16>
    tpu.vector_store %arg5[%c28_168, %c0_169], %274 {strides = array<i32>} : memref<36x256xbf16, #tpu.memory_space<vmem>>, vector<4x256xbf16>,
    %c17_170 = arith.constant 17 : index
    %c0_171 = arith.constant 0 : index
    %276 = vector.load %arg2[%c17_170, %c0_171] : memref<27x256xf32, #tpu.memory_space<vmem>>, vector<1x256xf32>
    %c222_i32_172 = arith.constant 222 : i32
    %277 = tpu.dynamic_rotate %231 by %c222_i32_172 dim 1 : vector<4x256xf32>, i32 -> vector<4x256xf32>
    %278 = vector.broadcast %276 : vector<1x256xf32> to vector<4x256xf32>
    %279 = arith.mulf %277, %278 : vector<4x256xf32>
    %280 = arith.truncf %279 : vector<4x256xf32> to vector<4x256xbf16>
    %c32_173 = arith.constant 32 : index
    %c0_174 = arith.constant 0 : index
    %281 = vector.load %arg5[%c32_173, %c0_174] : memref<36x256xbf16, #tpu.memory_space<vmem>>, vector<4x256xbf16>
    tpu.vector_store %arg5[%c32_173, %c0_174], %280 {strides = array<i32>} : memref<36x256xbf16, #tpu.memory_space<vmem>>, vector<4x256xbf16>,
    %c0_175 = arith.constant 0 : index
    %c0_176 = arith.constant 0 : index
    %282 = vector.load %arg5[%c0_175, %c0_176] : memref<36x256xbf16, #tpu.memory_space<vmem>>, vector<36x256xbf16>
    %cst_177 = arith.constant dense<0.000000e+00> : vector<4x256xf32>
    %283 = tpu.matmul %157, %282, %cst_177 {dimension_numbers = #tpu.dot_dimension_numbers<[1], [0], [0], [1], [0, 0, 1, 1], [], []>} : vector<4x36xbf16>, vector<36x256xbf16>, vector<4x256xf32> -> vector<4x256xf32>
    %cst_178 = arith.constant dense<0.000000e+00> : vector<4xf32>
    %284 = vector.multi_reduction <add>, %283, %cst_178 [1] : vector<4x256xf32> to vector<4xf32>
    %285 = vector.shape_cast %284 : vector<4xf32> to vector<4x1xf32>
    %286 = arith.mulf %283, %283 : vector<4x256xf32>
    %cst_179 = arith.constant dense<0.000000e+00> : vector<4xf32>
    %287 = vector.multi_reduction <add>, %286, %cst_179 [1] : vector<4x256xf32> to vector<4xf32>
    %288 = vector.shape_cast %287 : vector<4xf32> to vector<4x1xf32>
    %cst_180 = arith.constant 3.906250e-03 : f32
    %289 = vector.broadcast %cst_180 : f32 to vector<4x1xf32>
    %290 = arith.mulf %285, %289 : vector<4x1xf32>
    %cst_181 = arith.constant 3.906250e-03 : f32
    %291 = vector.broadcast %cst_181 : f32 to vector<4x1xf32>
    %292 = arith.mulf %288, %291 : vector<4x1xf32>
    %293 = arith.mulf %290, %290 : vector<4x1xf32>
    %294 = arith.subf %292, %293 : vector<4x1xf32>
    %cst_182 = arith.constant 0.000000e+00 : f32
    %295 = vector.broadcast %cst_182 : f32 to vector<4x1xf32>
    %296 = arith.maximumf %294, %295 : vector<4x1xf32>
    %297 = vector.broadcast %290 : vector<4x1xf32> to vector<4x256xf32>
    %298 = arith.subf %283, %297 : vector<4x256xf32>
    %cst_183 = arith.constant 9.99999974E-6 : f32
    %299 = vector.broadcast %cst_183 : f32 to vector<4x1xf32>
    %300 = arith.addf %296, %299 : vector<4x1xf32>
    %301 = math.rsqrt %300 : vector<4x1xf32>
    %302 = vector.broadcast %301 : vector<4x1xf32> to vector<4x256xf32>
    %303 = arith.mulf %298, %302 : vector<4x256xf32>
    %304 = arith.addf %153, %303 : vector<4x256xf32>
    %c4_184 = arith.constant 4 : index
    %c0_185 = arith.constant 0 : index
    %c0_186 = arith.constant 0 : index
    %305 = vector.load %arg3[%c4_184, %c0_185, %c0_186] : memref<6x4x36xbf16, #tpu.memory_space<vmem>>, vector<1x4x36xbf16>
    %306 = vector.shape_cast %305 : vector<1x4x36xbf16> to vector<4x36xbf16>
    %c5_187 = arith.constant 5 : index
    %c0_188 = arith.constant 0 : index
    %c0_189 = arith.constant 0 : index
    %307 = vector.load %arg3[%c5_187, %c0_188, %c0_189] : memref<6x4x36xbf16, #tpu.memory_space<vmem>>, vector<1x4x36xbf16>
    %308 = vector.shape_cast %307 : vector<1x4x36xbf16> to vector<4x36xbf16>
    %c18 = arith.constant 18 : index
    %c0_190 = arith.constant 0 : index
    %309 = vector.load %arg2[%c18, %c0_190] : memref<27x256xf32, #tpu.memory_space<vmem>>, vector<1x256xf32>
    %c68_i32 = arith.constant 68 : i32
    %310 = tpu.dynamic_rotate %1 by %c68_i32 dim 1 : vector<4x256xf32>, i32 -> vector<4x256xf32>
    %311 = vector.broadcast %309 : vector<1x256xf32> to vector<4x256xf32>
    %312 = arith.mulf %310, %311 : vector<4x256xf32>
    %313 = arith.truncf %312 : vector<4x256xf32> to vector<4x256xbf16>
    %c0_191 = arith.constant 0 : index
    %c0_192 = arith.constant 0 : index
    %314 = vector.load %arg5[%c0_191, %c0_192] : memref<36x256xbf16, #tpu.memory_space<vmem>>, vector<4x256xbf16>
    tpu.vector_store %arg5[%c0_191, %c0_192], %313 {strides = array<i32>} : memref<36x256xbf16, #tpu.memory_space<vmem>>, vector<4x256xbf16>,
    %c19 = arith.constant 19 : index
    %c0_193 = arith.constant 0 : index
    %315 = vector.load %arg2[%c19, %c0_193] : memref<27x256xf32, #tpu.memory_space<vmem>>, vector<1x256xf32>
    %c64_i32 = arith.constant 64 : i32
    %316 = tpu.dynamic_rotate %1 by %c64_i32 dim 1 : vector<4x256xf32>, i32 -> vector<4x256xf32>
    %317 = vector.broadcast %315 : vector<1x256xf32> to vector<4x256xf32>
    %318 = arith.mulf %316, %317 : vector<4x256xf32>
    %319 = arith.truncf %318 : vector<4x256xf32> to vector<4x256xbf16>
    %c4_194 = arith.constant 4 : index
    %c0_195 = arith.constant 0 : index
    %320 = vector.load %arg5[%c4_194, %c0_195] : memref<36x256xbf16, #tpu.memory_space<vmem>>, vector<4x256xbf16>
    tpu.vector_store %arg5[%c4_194, %c0_195], %319 {strides = array<i32>} : memref<36x256xbf16, #tpu.memory_space<vmem>>, vector<4x256xbf16>,
    %c20_196 = arith.constant 20 : index
    %c0_197 = arith.constant 0 : index
    %321 = vector.load %arg2[%c20_196, %c0_197] : memref<27x256xf32, #tpu.memory_space<vmem>>, vector<1x256xf32>
    %c60_i32 = arith.constant 60 : i32
    %322 = tpu.dynamic_rotate %1 by %c60_i32 dim 1 : vector<4x256xf32>, i32 -> vector<4x256xf32>
    %323 = vector.broadcast %321 : vector<1x256xf32> to vector<4x256xf32>
    %324 = arith.mulf %322, %323 : vector<4x256xf32>
    %325 = arith.truncf %324 : vector<4x256xf32> to vector<4x256xbf16>
    %c8_198 = arith.constant 8 : index
    %c0_199 = arith.constant 0 : index
    %326 = vector.load %arg5[%c8_198, %c0_199] : memref<36x256xbf16, #tpu.memory_space<vmem>>, vector<4x256xbf16>
    tpu.vector_store %arg5[%c8_198, %c0_199], %325 {strides = array<i32>} : memref<36x256xbf16, #tpu.memory_space<vmem>>, vector<4x256xbf16>,
    %c21 = arith.constant 21 : index
    %c0_200 = arith.constant 0 : index
    %327 = vector.load %arg2[%c21, %c0_200] : memref<27x256xf32, #tpu.memory_space<vmem>>, vector<1x256xf32>
    %c4_i32 = arith.constant 4 : i32
    %328 = tpu.dynamic_rotate %1 by %c4_i32 dim 1 : vector<4x256xf32>, i32 -> vector<4x256xf32>
    %329 = vector.broadcast %327 : vector<1x256xf32> to vector<4x256xf32>
    %330 = arith.mulf %328, %329 : vector<4x256xf32>
    %331 = arith.truncf %330 : vector<4x256xf32> to vector<4x256xbf16>
    %c12_201 = arith.constant 12 : index
    %c0_202 = arith.constant 0 : index
    %332 = vector.load %arg5[%c12_201, %c0_202] : memref<36x256xbf16, #tpu.memory_space<vmem>>, vector<4x256xbf16>
    tpu.vector_store %arg5[%c12_201, %c0_202], %331 {strides = array<i32>} : memref<36x256xbf16, #tpu.memory_space<vmem>>, vector<4x256xbf16>,
    %333 = arith.truncf %1 : vector<4x256xf32> to vector<4x256xbf16>
    %c16_203 = arith.constant 16 : index
    %c0_204 = arith.constant 0 : index
    %334 = vector.load %arg5[%c16_203, %c0_204] : memref<36x256xbf16, #tpu.memory_space<vmem>>, vector<4x256xbf16>
    tpu.vector_store %arg5[%c16_203, %c0_204], %333 {strides = array<i32>} : memref<36x256xbf16, #tpu.memory_space<vmem>>, vector<4x256xbf16>,
    %c23 = arith.constant 23 : index
    %c0_205 = arith.constant 0 : index
    %335 = vector.load %arg2[%c23, %c0_205] : memref<27x256xf32, #tpu.memory_space<vmem>>, vector<1x256xf32>
    %c252_i32 = arith.constant 252 : i32
    %336 = tpu.dynamic_rotate %1 by %c252_i32 dim 1 : vector<4x256xf32>, i32 -> vector<4x256xf32>
    %337 = vector.broadcast %335 : vector<1x256xf32> to vector<4x256xf32>
    %338 = arith.mulf %336, %337 : vector<4x256xf32>
    %339 = arith.truncf %338 : vector<4x256xf32> to vector<4x256xbf16>
    %c20_206 = arith.constant 20 : index
    %c0_207 = arith.constant 0 : index
    %340 = vector.load %arg5[%c20_206, %c0_207] : memref<36x256xbf16, #tpu.memory_space<vmem>>, vector<4x256xbf16>
    tpu.vector_store %arg5[%c20_206, %c0_207], %339 {strides = array<i32>} : memref<36x256xbf16, #tpu.memory_space<vmem>>, vector<4x256xbf16>,
    %c24_208 = arith.constant 24 : index
    %c0_209 = arith.constant 0 : index
    %341 = vector.load %arg2[%c24_208, %c0_209] : memref<27x256xf32, #tpu.memory_space<vmem>>, vector<1x256xf32>
    %c196_i32 = arith.constant 196 : i32
    %342 = tpu.dynamic_rotate %1 by %c196_i32 dim 1 : vector<4x256xf32>, i32 -> vector<4x256xf32>
    %343 = vector.broadcast %341 : vector<1x256xf32> to vector<4x256xf32>
    %344 = arith.mulf %342, %343 : vector<4x256xf32>
    %345 = arith.truncf %344 : vector<4x256xf32> to vector<4x256xbf16>
    %c24_210 = arith.constant 24 : index
    %c0_211 = arith.constant 0 : index
    %346 = vector.load %arg5[%c24_210, %c0_211] : memref<36x256xbf16, #tpu.memory_space<vmem>>, vector<4x256xbf16>
    tpu.vector_store %arg5[%c24_210, %c0_211], %345 {strides = array<i32>} : memref<36x256xbf16, #tpu.memory_space<vmem>>, vector<4x256xbf16>,
    %c25 = arith.constant 25 : index
    %c0_212 = arith.constant 0 : index
    %347 = vector.load %arg2[%c25, %c0_212] : memref<27x256xf32, #tpu.memory_space<vmem>>, vector<1x256xf32>
    %c192_i32 = arith.constant 192 : i32
    %348 = tpu.dynamic_rotate %1 by %c192_i32 dim 1 : vector<4x256xf32>, i32 -> vector<4x256xf32>
    %349 = vector.broadcast %347 : vector<1x256xf32> to vector<4x256xf32>
    %350 = arith.mulf %348, %349 : vector<4x256xf32>
    %351 = arith.truncf %350 : vector<4x256xf32> to vector<4x256xbf16>
    %c28_213 = arith.constant 28 : index
    %c0_214 = arith.constant 0 : index
    %352 = vector.load %arg5[%c28_213, %c0_214] : memref<36x256xbf16, #tpu.memory_space<vmem>>, vector<4x256xbf16>
    tpu.vector_store %arg5[%c28_213, %c0_214], %351 {strides = array<i32>} : memref<36x256xbf16, #tpu.memory_space<vmem>>, vector<4x256xbf16>,
    %c26 = arith.constant 26 : index
    %c0_215 = arith.constant 0 : index
    %353 = vector.load %arg2[%c26, %c0_215] : memref<27x256xf32, #tpu.memory_space<vmem>>, vector<1x256xf32>
    %c188_i32 = arith.constant 188 : i32
    %354 = tpu.dynamic_rotate %1 by %c188_i32 dim 1 : vector<4x256xf32>, i32 -> vector<4x256xf32>
    %355 = vector.broadcast %353 : vector<1x256xf32> to vector<4x256xf32>
    %356 = arith.mulf %354, %355 : vector<4x256xf32>
    %357 = arith.truncf %356 : vector<4x256xf32> to vector<4x256xbf16>
    %c32_216 = arith.constant 32 : index
    %c0_217 = arith.constant 0 : index
    %358 = vector.load %arg5[%c32_216, %c0_217] : memref<36x256xbf16, #tpu.memory_space<vmem>>, vector<4x256xbf16>
    tpu.vector_store %arg5[%c32_216, %c0_217], %357 {strides = array<i32>} : memref<36x256xbf16, #tpu.memory_space<vmem>>, vector<4x256xbf16>,
    %c0_218 = arith.constant 0 : index
    %c0_219 = arith.constant 0 : index
    %359 = vector.load %arg5[%c0_218, %c0_219] : memref<36x256xbf16, #tpu.memory_space<vmem>>, vector<36x256xbf16>
    %cst_220 = arith.constant dense<0.000000e+00> : vector<4x256xf32>
    %360 = tpu.matmul %306, %359, %cst_220 {dimension_numbers = #tpu.dot_dimension_numbers<[1], [0], [0], [1], [0, 0, 1, 1], [], []>} : vector<4x36xbf16>, vector<36x256xbf16>, vector<4x256xf32> -> vector<4x256xf32>
    %cst_221 = arith.constant dense<0.000000e+00> : vector<4xf32>
    %361 = vector.multi_reduction <add>, %360, %cst_221 [1] : vector<4x256xf32> to vector<4xf32>
    %362 = vector.shape_cast %361 : vector<4xf32> to vector<4x1xf32>
    %363 = arith.mulf %360, %360 : vector<4x256xf32>
    %cst_222 = arith.constant dense<0.000000e+00> : vector<4xf32>
    %364 = vector.multi_reduction <add>, %363, %cst_222 [1] : vector<4x256xf32> to vector<4xf32>
    %365 = vector.shape_cast %364 : vector<4xf32> to vector<4x1xf32>
    %cst_223 = arith.constant 3.906250e-03 : f32
    %366 = vector.broadcast %cst_223 : f32 to vector<4x1xf32>
    %367 = arith.mulf %362, %366 : vector<4x1xf32>
    %cst_224 = arith.constant 3.906250e-03 : f32
    %368 = vector.broadcast %cst_224 : f32 to vector<4x1xf32>
    %369 = arith.mulf %365, %368 : vector<4x1xf32>
    %370 = arith.mulf %367, %367 : vector<4x1xf32>
    %371 = arith.subf %369, %370 : vector<4x1xf32>
    %cst_225 = arith.constant 0.000000e+00 : f32
    %372 = vector.broadcast %cst_225 : f32 to vector<4x1xf32>
    %373 = arith.maximumf %371, %372 : vector<4x1xf32>
    %374 = vector.broadcast %367 : vector<4x1xf32> to vector<4x256xf32>
    %375 = arith.subf %360, %374 : vector<4x256xf32>
    %cst_226 = arith.constant 9.99999974E-6 : f32
    %376 = vector.broadcast %cst_226 : f32 to vector<4x1xf32>
    %377 = arith.addf %373, %376 : vector<4x1xf32>
    %378 = math.rsqrt %377 : vector<4x1xf32>
    %379 = vector.broadcast %378 : vector<4x1xf32> to vector<4x256xf32>
    %380 = arith.mulf %375, %379 : vector<4x256xf32>
    %cst_227 = arith.constant 0.000000e+00 : f32
    %381 = vector.broadcast %cst_227 : f32 to vector<4x256xf32>
    %382 = arith.maximumf %380, %381 : vector<4x256xf32>
    %c18_228 = arith.constant 18 : index
    %c0_229 = arith.constant 0 : index
    %383 = vector.load %arg2[%c18_228, %c0_229] : memref<27x256xf32, #tpu.memory_space<vmem>>, vector<1x256xf32>
    %c68_i32_230 = arith.constant 68 : i32
    %384 = tpu.dynamic_rotate %382 by %c68_i32_230 dim 1 : vector<4x256xf32>, i32 -> vector<4x256xf32>
    %385 = vector.broadcast %383 : vector<1x256xf32> to vector<4x256xf32>
    %386 = arith.mulf %384, %385 : vector<4x256xf32>
    %387 = arith.truncf %386 : vector<4x256xf32> to vector<4x256xbf16>
    %c0_231 = arith.constant 0 : index
    %c0_232 = arith.constant 0 : index
    %388 = vector.load %arg5[%c0_231, %c0_232] : memref<36x256xbf16, #tpu.memory_space<vmem>>, vector<4x256xbf16>
    tpu.vector_store %arg5[%c0_231, %c0_232], %387 {strides = array<i32>} : memref<36x256xbf16, #tpu.memory_space<vmem>>, vector<4x256xbf16>,
    %c19_233 = arith.constant 19 : index
    %c0_234 = arith.constant 0 : index
    %389 = vector.load %arg2[%c19_233, %c0_234] : memref<27x256xf32, #tpu.memory_space<vmem>>, vector<1x256xf32>
    %c64_i32_235 = arith.constant 64 : i32
    %390 = tpu.dynamic_rotate %382 by %c64_i32_235 dim 1 : vector<4x256xf32>, i32 -> vector<4x256xf32>
    %391 = vector.broadcast %389 : vector<1x256xf32> to vector<4x256xf32>
    %392 = arith.mulf %390, %391 : vector<4x256xf32>
    %393 = arith.truncf %392 : vector<4x256xf32> to vector<4x256xbf16>
    %c4_236 = arith.constant 4 : index
    %c0_237 = arith.constant 0 : index
    %394 = vector.load %arg5[%c4_236, %c0_237] : memref<36x256xbf16, #tpu.memory_space<vmem>>, vector<4x256xbf16>
    tpu.vector_store %arg5[%c4_236, %c0_237], %393 {strides = array<i32>} : memref<36x256xbf16, #tpu.memory_space<vmem>>, vector<4x256xbf16>,
    %c20_238 = arith.constant 20 : index
    %c0_239 = arith.constant 0 : index
    %395 = vector.load %arg2[%c20_238, %c0_239] : memref<27x256xf32, #tpu.memory_space<vmem>>, vector<1x256xf32>
    %c60_i32_240 = arith.constant 60 : i32
    %396 = tpu.dynamic_rotate %382 by %c60_i32_240 dim 1 : vector<4x256xf32>, i32 -> vector<4x256xf32>
    %397 = vector.broadcast %395 : vector<1x256xf32> to vector<4x256xf32>
    %398 = arith.mulf %396, %397 : vector<4x256xf32>
    %399 = arith.truncf %398 : vector<4x256xf32> to vector<4x256xbf16>
    %c8_241 = arith.constant 8 : index
    %c0_242 = arith.constant 0 : index
    %400 = vector.load %arg5[%c8_241, %c0_242] : memref<36x256xbf16, #tpu.memory_space<vmem>>, vector<4x256xbf16>
    tpu.vector_store %arg5[%c8_241, %c0_242], %399 {strides = array<i32>} : memref<36x256xbf16, #tpu.memory_space<vmem>>, vector<4x256xbf16>,
    %c21_243 = arith.constant 21 : index
    %c0_244 = arith.constant 0 : index
    %401 = vector.load %arg2[%c21_243, %c0_244] : memref<27x256xf32, #tpu.memory_space<vmem>>, vector<1x256xf32>
    %c4_i32_245 = arith.constant 4 : i32
    %402 = tpu.dynamic_rotate %382 by %c4_i32_245 dim 1 : vector<4x256xf32>, i32 -> vector<4x256xf32>
    %403 = vector.broadcast %401 : vector<1x256xf32> to vector<4x256xf32>
    %404 = arith.mulf %402, %403 : vector<4x256xf32>
    %405 = arith.truncf %404 : vector<4x256xf32> to vector<4x256xbf16>
    %c12_246 = arith.constant 12 : index
    %c0_247 = arith.constant 0 : index
    %406 = vector.load %arg5[%c12_246, %c0_247] : memref<36x256xbf16, #tpu.memory_space<vmem>>, vector<4x256xbf16>
    tpu.vector_store %arg5[%c12_246, %c0_247], %405 {strides = array<i32>} : memref<36x256xbf16, #tpu.memory_space<vmem>>, vector<4x256xbf16>,
    %407 = arith.truncf %382 : vector<4x256xf32> to vector<4x256xbf16>
    %c16_248 = arith.constant 16 : index
    %c0_249 = arith.constant 0 : index
    %408 = vector.load %arg5[%c16_248, %c0_249] : memref<36x256xbf16, #tpu.memory_space<vmem>>, vector<4x256xbf16>
    tpu.vector_store %arg5[%c16_248, %c0_249], %407 {strides = array<i32>} : memref<36x256xbf16, #tpu.memory_space<vmem>>, vector<4x256xbf16>,
    %c23_250 = arith.constant 23 : index
    %c0_251 = arith.constant 0 : index
    %409 = vector.load %arg2[%c23_250, %c0_251] : memref<27x256xf32, #tpu.memory_space<vmem>>, vector<1x256xf32>
    %c252_i32_252 = arith.constant 252 : i32
    %410 = tpu.dynamic_rotate %382 by %c252_i32_252 dim 1 : vector<4x256xf32>, i32 -> vector<4x256xf32>
    %411 = vector.broadcast %409 : vector<1x256xf32> to vector<4x256xf32>
    %412 = arith.mulf %410, %411 : vector<4x256xf32>
    %413 = arith.truncf %412 : vector<4x256xf32> to vector<4x256xbf16>
    %c20_253 = arith.constant 20 : index
    %c0_254 = arith.constant 0 : index
    %414 = vector.load %arg5[%c20_253, %c0_254] : memref<36x256xbf16, #tpu.memory_space<vmem>>, vector<4x256xbf16>
    tpu.vector_store %arg5[%c20_253, %c0_254], %413 {strides = array<i32>} : memref<36x256xbf16, #tpu.memory_space<vmem>>, vector<4x256xbf16>,
    %c24_255 = arith.constant 24 : index
    %c0_256 = arith.constant 0 : index
    %415 = vector.load %arg2[%c24_255, %c0_256] : memref<27x256xf32, #tpu.memory_space<vmem>>, vector<1x256xf32>
    %c196_i32_257 = arith.constant 196 : i32
    %416 = tpu.dynamic_rotate %382 by %c196_i32_257 dim 1 : vector<4x256xf32>, i32 -> vector<4x256xf32>
    %417 = vector.broadcast %415 : vector<1x256xf32> to vector<4x256xf32>
    %418 = arith.mulf %416, %417 : vector<4x256xf32>
    %419 = arith.truncf %418 : vector<4x256xf32> to vector<4x256xbf16>
    %c24_258 = arith.constant 24 : index
    %c0_259 = arith.constant 0 : index
    %420 = vector.load %arg5[%c24_258, %c0_259] : memref<36x256xbf16, #tpu.memory_space<vmem>>, vector<4x256xbf16>
    tpu.vector_store %arg5[%c24_258, %c0_259], %419 {strides = array<i32>} : memref<36x256xbf16, #tpu.memory_space<vmem>>, vector<4x256xbf16>,
    %c25_260 = arith.constant 25 : index
    %c0_261 = arith.constant 0 : index
    %421 = vector.load %arg2[%c25_260, %c0_261] : memref<27x256xf32, #tpu.memory_space<vmem>>, vector<1x256xf32>
    %c192_i32_262 = arith.constant 192 : i32
    %422 = tpu.dynamic_rotate %382 by %c192_i32_262 dim 1 : vector<4x256xf32>, i32 -> vector<4x256xf32>
    %423 = vector.broadcast %421 : vector<1x256xf32> to vector<4x256xf32>
    %424 = arith.mulf %422, %423 : vector<4x256xf32>
    %425 = arith.truncf %424 : vector<4x256xf32> to vector<4x256xbf16>
    %c28_263 = arith.constant 28 : index
    %c0_264 = arith.constant 0 : index
    %426 = vector.load %arg5[%c28_263, %c0_264] : memref<36x256xbf16, #tpu.memory_space<vmem>>, vector<4x256xbf16>
    tpu.vector_store %arg5[%c28_263, %c0_264], %425 {strides = array<i32>} : memref<36x256xbf16, #tpu.memory_space<vmem>>, vector<4x256xbf16>,
    %c26_265 = arith.constant 26 : index
    %c0_266 = arith.constant 0 : index
    %427 = vector.load %arg2[%c26_265, %c0_266] : memref<27x256xf32, #tpu.memory_space<vmem>>, vector<1x256xf32>
    %c188_i32_267 = arith.constant 188 : i32
    %428 = tpu.dynamic_rotate %382 by %c188_i32_267 dim 1 : vector<4x256xf32>, i32 -> vector<4x256xf32>
    %429 = vector.broadcast %427 : vector<1x256xf32> to vector<4x256xf32>
    %430 = arith.mulf %428, %429 : vector<4x256xf32>
    %431 = arith.truncf %430 : vector<4x256xf32> to vector<4x256xbf16>
    %c32_268 = arith.constant 32 : index
    %c0_269 = arith.constant 0 : index
    %432 = vector.load %arg5[%c32_268, %c0_269] : memref<36x256xbf16, #tpu.memory_space<vmem>>, vector<4x256xbf16>
    tpu.vector_store %arg5[%c32_268, %c0_269], %431 {strides = array<i32>} : memref<36x256xbf16, #tpu.memory_space<vmem>>, vector<4x256xbf16>,
    %c0_270 = arith.constant 0 : index
    %c0_271 = arith.constant 0 : index
    %433 = vector.load %arg5[%c0_270, %c0_271] : memref<36x256xbf16, #tpu.memory_space<vmem>>, vector<36x256xbf16>
    %cst_272 = arith.constant dense<0.000000e+00> : vector<4x256xf32>
    %434 = tpu.matmul %308, %433, %cst_272 {dimension_numbers = #tpu.dot_dimension_numbers<[1], [0], [0], [1], [0, 0, 1, 1], [], []>} : vector<4x36xbf16>, vector<36x256xbf16>, vector<4x256xf32> -> vector<4x256xf32>
    %cst_273 = arith.constant dense<0.000000e+00> : vector<4xf32>
    %435 = vector.multi_reduction <add>, %434, %cst_273 [1] : vector<4x256xf32> to vector<4xf32>
    %436 = vector.shape_cast %435 : vector<4xf32> to vector<4x1xf32>
    %437 = arith.mulf %434, %434 : vector<4x256xf32>
    %cst_274 = arith.constant dense<0.000000e+00> : vector<4xf32>
    %438 = vector.multi_reduction <add>, %437, %cst_274 [1] : vector<4x256xf32> to vector<4xf32>
    %439 = vector.shape_cast %438 : vector<4xf32> to vector<4x1xf32>
    %cst_275 = arith.constant 3.906250e-03 : f32
    %440 = vector.broadcast %cst_275 : f32 to vector<4x1xf32>
    %441 = arith.mulf %436, %440 : vector<4x1xf32>
    %cst_276 = arith.constant 3.906250e-03 : f32
    %442 = vector.broadcast %cst_276 : f32 to vector<4x1xf32>
    %443 = arith.mulf %439, %442 : vector<4x1xf32>
    %444 = arith.mulf %441, %441 : vector<4x1xf32>
    %445 = arith.subf %443, %444 : vector<4x1xf32>
    %cst_277 = arith.constant 0.000000e+00 : f32
    %446 = vector.broadcast %cst_277 : f32 to vector<4x1xf32>
    %447 = arith.maximumf %445, %446 : vector<4x1xf32>
    %448 = vector.broadcast %441 : vector<4x1xf32> to vector<4x256xf32>
    %449 = arith.subf %434, %448 : vector<4x256xf32>
    %cst_278 = arith.constant 9.99999974E-6 : f32
    %450 = vector.broadcast %cst_278 : f32 to vector<4x1xf32>
    %451 = arith.addf %447, %450 : vector<4x1xf32>
    %452 = math.rsqrt %451 : vector<4x1xf32>
    %453 = vector.broadcast %452 : vector<4x1xf32> to vector<4x256xf32>
    %454 = arith.mulf %449, %453 : vector<4x256xf32>
    %455 = arith.addf %304, %454 : vector<4x256xf32>
    %cst_279 = arith.constant 0.333333343 : f32
    %456 = vector.broadcast %cst_279 : f32 to vector<4x256xf32>
    %457 = arith.mulf %455, %456 : vector<4x256xf32>
    %458 = arith.addf %457, %1 : vector<4x256xf32>
    %cst_280 = arith.constant 0.000000e+00 : f32
    %459 = vector.broadcast %cst_280 : f32 to vector<4x256xf32>
    %460 = arith.maximumf %458, %459 : vector<4x256xf32>
    %c0_281 = arith.constant 0 : index
    %c0_282 = arith.constant 0 : index
    %c0_283 = arith.constant 0 : index
    %461 = vector.load %arg4[%c0_281, %c0_282, %c0_283] : memref<1x4x256xf32, #tpu.memory_space<vmem>>, vector<1x4x256xf32>
    %462 = vector.shape_cast %461 : vector<1x4x256xf32> to vector<4x256xf32>
    %463 = vector.shape_cast %460 : vector<4x256xf32> to vector<1x4x256xf32>
    tpu.vector_store %arg4[%c0_281, %c0_282, %c0_283], %463 {strides = array<i32>} : memref<1x4x256xf32, #tpu.memory_space<vmem>>, vector<1x4x256xf32>,
    return
  }
  func.func @transform_0(%arg0: i32) -> (i32, i32, i32) {
    %c0_i32 = arith.constant 0 : i32
    %c0_i32_0 = arith.constant 0 : i32
    %c0_i32_1 = arith.constant 0 : i32
    return %arg0, %c0_i32, %c0_i32_0 : i32, i32, i32
  }
  func.func @transform_1(%arg0: i32) -> (i32, i32) {
    %c0_i32 = arith.constant 0 : i32
    %c0_i32_0 = arith.constant 0 : i32
    %c0_i32_1 = arith.constant 0 : i32
    return %c0_i32, %c0_i32_0 : i32, i32
  }
  func.func @transform_2(%arg0: i32) -> (i32, i32, i32) {
    %c0_i32 = arith.constant 0 : i32
    %c0_i32_0 = arith.constant 0 : i32
    %c0_i32_1 = arith.constant 0 : i32
    %c0_i32_2 = arith.constant 0 : i32
    return %c0_i32, %c0_i32_0, %c0_i32_1 : i32, i32, i32
  }
  func.func @transform_3(%arg0: i32) -> (i32, i32, i32) {
    %c0_i32 = arith.constant 0 : i32
    %c0_i32_0 = arith.constant 0 : i32
    %c0_i32_1 = arith.constant 0 : i32
    return %arg0, %c0_i32, %c0_i32_0 : i32, i32, i32
  }
}

</mosaic_0001>

<bundles_post_ra>
// kernel: tpu_custom_call.1
= control target key start
LH: loop header
LB: loop body
LE: loop exit
PB: predicated region body
PF: predicated region fallthrough
CT: control target
= control target key end

     0   :  { %8 = vsyncpa [#allocation4], 0  ;;  %s3797_s0 = inlined_call_operand.hbm [shape: f32[2,4,256], index: 0, kind: input, shape index: {}]   ;;  %s3798_s1 = inlined_call_operand.hbm [shape: f32[27,256], index: 1, kind: input, shape index: {}]   ;;  %s3799_s2 = inlined_call_operand.hbm [shape: bf16[6,4,36], index: 2, kind: input, shape index: {}]   ;;  %s3800_s3 = inlined_call_operand.hbm [shape: f32[2,4,256], index: 3, kind: output, shape index: {}]  }
   0x1   :  { %10 = vsyncpa [#allocation4 + $0x1], 0 }
   0x2   :  { %11 = vsyncpa [#allocation7], 0 }
   0x3   :  { %12 = vsyncpa [#allocation5], 0 }
   0x4   :  { %14 = vsyncpa [#allocation5 + $0x1], 0  ;;  %s2966_s12 = smov 0   ;;  %s2968_s13 = smov 0  }
   0x5   :  { %s2970_s14 = smov 0   ;;  %s2972_s15 = smov 0  }
   0x6 LB: > { %s2987_s16 = sadd.s32 4294967295, %s2914_s15   ;;  %s2444_s17 = sadd.s32 4294967294, %s2914_s15   ;;  %s2914_s15 = sphi %s2972_s15, %s3820_s15   ;;  %s2910_s14 = sphi %s2970_s14, %s3819_s14   ;;  %s2906_s13 = sphi %s2968_s13, %s3818_s13   ;;  %s2902_s12 = sphi %s2966_s12, %s3817_s12  }
   0x7   : > { %p40_p0 = scmp.ne.s32.totalorder %s2906_s13, %s2902_s12  ;;  %p3801_p1 = scmp.eq.s32.totalorder %s2987_s16, 0 }
   0x8   : > { %p112_p3 = scmp.eq.s32.totalorder %s2444_s17, 1  ;;  %p2445_p5 = scmp.ge.s32.totalorder %s2914_s15, 1 }
   0x9   : > { %p2996_p4 = por %p3801_p1, %p40_p0  ;;  %p119_p7 = scmp.lt.s32.totalorder %s2914_s15, 3 }
   0xa   : > { %p3001_p6 = por %p112_p3, %p40_p0  ;;  %s2916_s21 = smov [#allocation6]  }
   0xb   : > { %s3804_s18 = scalar_select %p2996_p4, 1, 0 }
   0xc   : > { %s3805_s19 = scalar_select %p3001_p6, 1, 0 }
   0xd   : > { %p3006_p8 = pnand %p2445_p5, %p119_p7  ;;  %s131_s22 = sshll.u32 %s2916_s21, 4  ;;  %s3010_s22 = int_to_ptr.vmem [resolvable:$true] %s131_s22 }
   0xe   : > { %s2917_s24 = smov [#allocation8]   ;;  %s2758_s28 = scalar_lea.hbm %s3798_s1, 1024 }
   0xf   : > { %p2628_p9 = pneg %p3006_p8  ;;  %s144_s25 = sshll.u32 %s2917_s24, 4  ;;  %s3021_s25 = int_to_ptr.vmem [resolvable:$true] %s144_s25 }
  0x10   : > { %p2759_p12 = scmp.ne.s32.totalorder %s3798_s1, %s2758_s28  ;;  %p2765_p5 = scmp.lt.u32.totalorder %s2758_s28, %s3798_s1 }
  0x11   : > { %p3017_p11 = pnand %p2628_p9, %p3801_p1 }
  0x13   : > { %p2760_p13 = pneg %p3017_p11 }
  0x15   : > { %p2761_p0 = pnand %p2760_p13, %p2759_p12 }
  0x17   : > { %p2762_p3 = pneg %p2761_p0 }
  0x19   : > { %p2767_p7 = pnand %p2765_p5, %p2762_p3 }
  0x1b   : > { %2770 = shalt.err (!%p2767_p7)
}
  0x1c   : > { %s2771_s6 = scalar_lea.vmem %s3010_s22, 1024  ;;  %p2779_p2 = scmp.lt.s32.totalorder %s3010_s22, %s3010_s22 }
  0x1d   : > { %p2772_p9 = scmp.ne.s32.totalorder %s3010_s22, %s2771_s6  ;;  %p2780_p12 = scmp.lt.s32.totalorder %s2771_s6, %s2771_s6 }
  0x1f   : > { %p2774_p10 = pnand %p2772_p9, %p2760_p13  ;;  %p2781_p0 = por %p2780_p12, %p2779_p2 }
  0x21   : > { %p2775_p1 = pneg %p2774_p10 }
  0x23   : > { %p2782_p6 = pnand %p2781_p0, %p2775_p1 }
  0x25   : > { %2785 = shalt.err (!%p2782_p6)
}
  0x26   : > { %s2918_s7 = smov 256   ;;  %s2919_s8 = smov 16  }
  0x27   : > { %2631 = dma.hbm_to_vmem [thread:$0]  (!%p3017_p11), %s3798_s1, 1024, %s3010_s22, [#allocation7], %s2918_s7, %s2918_s7, %s2919_s8  }
  0x28   : > { %s2786_s21 = scalar_lea.hbm %s3799_s2, 192 }
  0x29   : > { %p2787_p2 = scmp.ne.s32.totalorder %s3799_s2, %s2786_s21  ;;  %p2793_p10 = scmp.lt.u32.totalorder %s2786_s21, %s3799_s2 }
  0x2b   : > { %p2789_p1 = pnand %p2787_p2, %p2760_p13 }
  0x2d   : > { %p2790_p6 = pneg %p2789_p1 }
  0x2f   : > { %p2795_p3 = pnand %p2793_p10, %p2790_p6 }
  0x31   : > { %2798 = shalt.err (!%p2795_p3)
}
  0x32   : > { %s2799_s22 = scalar_lea.vmem %s3021_s25, 192  ;;  %p2807_p12 = scmp.lt.s32.totalorder %s3021_s25, %s3021_s25 }
  0x33   : > { %p2800_p5 = scmp.ne.s32.totalorder %s3021_s25, %s2799_s22  ;;  %p2808_p0 = scmp.lt.s32.totalorder %s2799_s22, %s2799_s22 }
  0x35   : > { %p2802_p7 = pnand %p2800_p5, %p2760_p13  ;;  %p2809_p2 = por %p2808_p0, %p2807_p12 }
  0x37   : > { %p2803_p9 = pneg %p2802_p7 }
  0x39   : > { %p2810_p1 = pnand %p2809_p2, %p2803_p9 }
  0x3b   : > { %2813 = shalt.err (!%p2810_p1)
}
  0x3c   : > { %s2920_s29 = smov 32   ;;  %s2921_s30 = smov 2  }
  0x3d   : > { %2634 = dma.hbm_to_vmem [thread:$0]  (!%p3017_p11), %s3799_s2, 192, %s3021_s25, [#allocation7], %s2920_s29, %s2920_s29, %s2921_s30  }
  0x3e   : > { %s3076_s6 = sadd.s32 1, %s2914_s15   ;;  %s27_s8 = sadd.s32 1, %s2910_s14 }
  0x3f   : > { %s24_s7 = ssub.s32 %s2914_s15, %s3076_s6  ;;  %p34_p6 = scmp.ne.s32.totalorder %s2910_s14, %s2906_s13 }
  0x40   : > { %p25_p13 = scmp.eq.s32.totalorder %s24_s7, 0  ;;  %p35_p10 = scmp.eq.s32.totalorder %s2914_s15, 0 }
  0x41   : > { %p3808_p5 = scmp.eq.s32.totalorder %s2987_s16, 1  ;;  %p2645_p9 = scmp.lt.s32.totalorder %s2914_s15, 2 }
  0x42   : > { %s3085_s9 = scalar_select %p25_p13, %s2910_s14, %s27_s8  }
  0x43   : > { %p36_p3 = por %p35_p10, %p34_p6  ;;  %p3089_p7 = por %p3808_p5, %p34_p6 }
  0x44   : > { %s158_s23 = sand.u32 1, %s2910_s14   ;;  %s2562_s25 = sshll.u32 %s2914_s15, 7 }
  0x45   : > { %s3809_s10 = scalar_select %p3089_p7, 1, 0 }
  0x46   : > { %s2449_s11 = sshll.u32 %s158_s23, 3  ;;  %s3099_s24 = scalar_lea.hbm %s3797_s0, %s2562_s25 }
  0x47   : > { %s162_s26 = scalar_lea.vmem [#allocation3], %s2449_s11  ;;  %p3103_p11 = pnand %p2645_p9, %p36_p3 }
  0x48   : > { %s170_s27 = sshll.u32 %s162_s26, 4  ;;  %s159_s22 = scalar_lea.sflag [#allocation4], %s158_s23  ;;  %s3101_s27 = int_to_ptr.vmem [resolvable:$true] %s170_s27 }
  0x49   : > { %s2814_s29 = scalar_lea.hbm %s3099_s24, 128  ;;  %p2816_p0 = pneg %p3103_p11 }
  0x4a   : > { %p2815_p12 = scmp.ne.s32.totalorder %s3099_s24, %s2814_s29  ;;  %s2819_s5 = scalar_lea.hbm %s3797_s0, 256 }
  0x4b   : > { %p2820_p13 = scmp.lt.u32.totalorder %s3099_s24, %s3797_s0  ;;  %p2821_p6 = scmp.lt.u32.totalorder %s2819_s5, %s2814_s29 }
  0x4c   : > { %p2817_p2 = pnand %p2816_p0, %p2815_p12  ;;  %p2823_p3 = scmp.lt.u32.totalorder %s2814_s29, %s3099_s24 }
  0x4d   : > { %p2822_p10 = por %p2821_p6, %p2820_p13 }
  0x4e   : > { %p2818_p1 = pneg %p2817_p2 }
  0x4f   : > { %p2824_p5 = por %p2823_p3, %p2822_p10 }
  0x51   : > { %p2825_p9 = pnand %p2824_p5, %p2818_p1 }
  0x53   : > { %2828 = shalt.err (!%p2825_p9)
}
  0x54   : > { %s2829_s23 = scalar_lea.vmem %s3101_s27, 128  ;;  %s2922_s11 = smov [#allocation3]  }
  0x55   : > { %p2830_p12 = scmp.ne.s32.totalorder %s3101_s27, %s2829_s23  ;;  %s2834_s25 = sshll.u32 %s2922_s11, 4  ;;  %s2835_s25 = int_to_ptr.vmem [resolvable:$false] %s2834_s25 }
  0x56   : > { %s2836_s17 = scalar_lea.vmem %s2835_s25, 256  ;;  %p2837_p4 = scmp.lt.s32.totalorder %s3101_s27, %s2835_s25 }
  0x57   : > { %p2832_p2 = pnand %p2830_p12, %p2816_p0  ;;  %p2838_p13 = scmp.lt.s32.totalorder %s2836_s17, %s2829_s23 }
  0x59   : > { %p2833_p7 = pneg %p2832_p2  ;;  %p2839_p6 = por %p2838_p13, %p2837_p4 }
  0x5b   : > { %p2840_p10 = pnand %p2839_p6, %p2833_p7 }
  0x5d   : > { %2843 = shalt.err (!%p2840_p10)
}
  0x5e   : > { %2638 = dma.hbm_to_vmem [thread:$0]  (!%p3103_p11), %s3099_s24, 128, %s3101_s27, %s159_s22  }
  0x5f   : > { %179 = sbr.rel (%p3006_p8) target bundleno = 2317 (0x90d), region = 32  ;;  %s3135_s21 = sand.u32 (!%p3006_p8), 1, %s2906_s13  }
  0x60   : > { %s2453_s26 = sshll.u32 (!%p3006_p8), %s3135_s21, 3  ;;  %s182_s29 = scalar_lea.sflag (!%p3006_p8), [#allocation4], %s3135_s21 }
  0x61   : > { %s3141_s30 = scalar_lea.vmem (!%p3006_p8), [#allocation3], %s2453_s26  ;;  %p3811_p4 = scmp.ne.s32.totalorder (!%p3006_p8), %s3804_s18, 0 }
  0x66   : > { %2889 = dma.done.wait (%p3811_p4), %s182_s29, 128  }
  0x67   : > { %2891 = vsyncadd (%p3811_p4), %s182_s29, 4294967168  ;;  %p3812_p7 = scmp.eq.s32.totalorder %s2987_s16, 0 }
  0x69   : > { %2893 = dma.done.wait (%p3812_p7), [#allocation7], 1216   ;;  %p3813_p8 = pmov %p3812_p7 }
  0x6a   : > { %v3152_v0 = vld [vmem:[%s3141_s30] sm:$0xff]  ;;  %s2923_s20 = smov 1   ;;  %s2924_s24 = smov 16   ;;  %v2931_v3 = vmov 0   ;;  %v229_v4 = vlaneseq  ;;  %vm520_vm8 = vcmask 1041408   ;;  %vm516_vm9 = vcmask 293888  }
  0x6b   : > { %2895 = vsyncadd (%p3813_p8), [#allocation7], 4294966080  ;;  %321 = vrot.lane.b32.xlu1 %v3152_v0, %s2923_s20  ;;  %258 = vrot.lane.b32.xlu0 %v3152_v0, %s2924_s24  ;;  %v3160_v1 = vcombine.high %v3152_v0, %v3152_v0  ;;  %s2925_s18 = smov 17   ;;  %s2926_s27 = smov 15   ;;  %vm568_vm10 = vcmask 1043456  }
  0x6c   : > { %s2927_s28 = smov 127   ;;  %s2928_s22 = smov 112   ;;  %559 = vmatprep.mubr.bf16.mxu0 %v2931_v3  ;;  %910 = vmatprep.mubr.bf16.mxu1 %v2931_v3  ;;  %v236_v5 = vshrl.u32 %v229_v4, 7  ;;  %v3197_v6 = vand.u32 127, %v229_v4 }
  0x6d   : > { %v3168_v2 = vpack.c.bf16 %v3160_v1, %v3152_v0  ;;  %s2929_s4 = smov 113   ;;  %s2930_s5 = smov 111   ;;  %v320_v9 = vld [vmem:[#allocation6 + $0x3] ss:$8 sm:$0x3] }
  0x6e   : > { %v3199_v7 = vsub.s32 0, %v236_v5  ;;  %v3201_v8 = vsub.s32 1, %v236_v5  ;;  %vm325_vm0 = vcmp.lt.s32.totalorder %v3197_v6, 1  ;;  %v221_v14 = vld [vmem:[#allocation6] ss:$8 sm:$0x3] }
  0x6f   : > { %225 = vrot.lane.b32.xlu0 %v3152_v0, %s2925_s18  ;;  %323 = vrot.lane.b32.xlu1 %v3160_v1, %s2923_s20  ;;  %359 = vst [vmem:[#allocation2 + $0x10] sm:$0x33] %v3168_v2  ;;  %v257_v15 = vld [vmem:[#allocation6 + $0x1] ss:$8 sm:$0x3]  ;;  %vm231_vm1 = vcmp.lt.s32.totalorder %v3197_v6, 17 }
  0x70   : > { %v332_v12 = vrot.slane %v320_v9, %v3199_v7  ;;  %v336_v13 = vrot.slane %v320_v9, %v3201_v8  ;;  %v238_v20 = vrot.slane %v221_v14, %v3199_v7  ;;  %vm262_vm2 = vcmp.lt.s32.totalorder %v3197_v6, 16  ;;  %v289_v21 = vld [vmem:[#allocation6 + $0x2] ss:$8 sm:$0x3]  ;;  %s2932_s7 = smov 32   ;;  %s2933_s8 = smov 2  }
  0x71   : > { %v242_v24 = vrot.slane %v221_v14, %v3201_v8  ;;  %v269_v25 = vrot.slane %v257_v15, %v3199_v7  ;;  %v273_v26 = vrot.slane %v257_v15, %v3201_v8  ;;  %vm294_vm3 = vcmp.lt.s32.totalorder %v3197_v6, 15  ;;  %v361_v41 = vld [vmem:[#allocation6 + $0x5] ss:$8 sm:$0x3]  ;;  %s2934_s23 = smov 34   ;;  %s2935_s11 = smov 30  }
  0x72   : > { %v301_v30 = vrot.slane %v289_v21, %v3199_v7  ;;  %v305_v31 = vrot.slane %v289_v21, %v3201_v8  ;;  %vm366_vm4 = vcmp.lt.s32.totalorder %v3197_v6, 127  ;;  %v373_v50 = vrot.slane %v361_v41, %v3199_v7  ;;  %v424_v53 = vld [vmem:[#allocation6 + $0x7] ss:$8 sm:$0x3]  ;;  %s2936_s25 = smov 126   ;;  %s2937_s17 = smov 96  }
  0x73   : > { %227 = vrot.lane.b32.xlu1 %v3160_v1, %s2925_s18  ;;  %260 = vrot.lane.b32.xlu0 %v3160_v1, %s2924_s24  ;;  %v377_v51 = vrot.slane %v361_v41, %v3201_v8  ;;  %vm429_vm5 = vcmp.lt.s32.totalorder %v3197_v6, 112  ;;  %v436_v61 = vrot.slane %v424_v53, %v3199_v7  ;;  %v440_v62 = vrot.slane %v424_v53, %v3201_v8  ;;  %v393_v63 = vld [vmem:[#allocation6 + $0x6] ss:$8 sm:$0x3]  ;;  %s2938_s29 = smov 98   ;;  %p3814_p0 = scmp.ne.s32.totalorder %s3809_s10, 0 }
  0x74   : > { %vm398_vm6 = vcmp.lt.s32.totalorder %v3197_v6, 113  ;;  %vm461_vm7 = vcmp.lt.s32.totalorder %v3197_v6, 111  ;;  %vm985_vm11 = vcmp.lt.s32.totalorder %v3197_v6, 32  ;;  %vm1048_vm12 = vcmp.lt.s32.totalorder %v3197_v6, 2 }
  0x75   : > { %vm954_vm13 = vcmp.lt.s32.totalorder %v3197_v6, 34  ;;  %vm1017_vm14 = vcmp.lt.s32.totalorder %v3197_v6, 30  ;;  %vm1081_vm15 = vcmp.lt.s32.totalorder %v3197_v6, 126 }
  0x77   : > { %292 = vrot.lane.b32.xlu1 %v3160_v1, %s2926_s27  ;;  %290 = vrot.lane.b32.xlu0 %v3152_v0, %s2926_s27 }
  0x7b   : > { %364 = vrot.lane.b32.xlu1 %v3160_v1, %s2927_s28  ;;  %362 = vrot.lane.b32.xlu0 %v3152_v0, %s2927_s28 }
  0x7f   : > { %427 = vrot.lane.b32.xlu1 %v3160_v1, %s2928_s22  ;;  %425 = vrot.lane.b32.xlu0 %v3152_v0, %s2928_s22 }
  0x83   : > { %396 = vrot.lane.b32.xlu1 %v3160_v1, %s2929_s4  ;;  %394 = vrot.lane.b32.xlu0 %v3152_v0, %s2929_s4 }
  0x87   : > { %459 = vrot.lane.b32.xlu1 %v3160_v1, %s2930_s5  ;;  %457 = vrot.lane.b32.xlu0 %v3152_v0, %s2930_s5 }
  0xdd   : > { %v322_v10 = vpop.permute.xlu1 %321  ;;  %v259_v11 = vpop.permute.xlu0 %258 }
  0xe1   : > { %v226_v16 = vpop.permute.xlu0 %225  ;;  %v324_v17 = vpop.permute.xlu1 %323 }
  0xe2   : > { %v326_v18 = vsel %vm325_vm0, %v322_v10, %v324_v17  ;;  %v327_v19 = vsel %vm325_vm0, %v324_v17, %v322_v10  ;;  %v456_v17 = vld [vmem:[#allocation6 + $0x10] ss:$8 sm:$0x3] }
  0xe3   : > { %v339_v22 = vmul.f32 %v332_v12, %v327_v19  ;;  %v340_v23 = vmul.f32 %v336_v13, %v326_v18  ;;  %v405_v12 = vrot.slane %v393_v63, %v3199_v7 }
  0xe5   : > { %v2566_v27 = vpack.c.bf16 %v340_v23, %v339_v22  ;;  %v228_v28 = vpop.permute.xlu1 %227  ;;  %v261_v29 = vpop.permute.xlu0 %260 }
  0xe6   : > { %v232_v32 = vsel %vm231_vm1, %v226_v16, %v228_v28  ;;  %v233_v33 = vsel %vm231_vm1, %v228_v28, %v226_v16  ;;  %v263_v34 = vsel %vm262_vm2, %v259_v11, %v261_v29  ;;  %v264_v35 = vsel %vm262_vm2, %v261_v29, %v259_v11 }
  0xe7   : > { %v348_v36 = vrot.slane %v2566_v27, 6  ;;  %v245_v37 = vmul.f32 %v238_v20, %v233_v33  ;;  %v246_v38 = vmul.f32 %v242_v24, %v232_v32  ;;  %v276_v39 = vmul.f32 %v269_v25, %v264_v35 }
  0xe8   : > { %v277_v40 = vmul.f32 %v273_v26, %v263_v34  ;;  %v409_v16 = vrot.slane %v393_v63, %v3201_v8  ;;  %v468_v24 = vrot.slane %v456_v17, %v3199_v7  ;;  %v472_v29 = vrot.slane %v456_v17, %v3201_v8 }
  0xe9   : > { %350 = vst [vmem:[#allocation2 + $0x8] sm:$0xcc] %v348_v36  ;;  %v2563_v42 = vpack.c.bf16 %v246_v38, %v245_v37  ;;  %v293_v43 = vpop.permute.xlu1 %292  ;;  %v291_v44 = vpop.permute.xlu0 %290 }
  0xea   : > { %v2564_v45 = vpack.c.bf16 %v277_v40, %v276_v39  ;;  %v295_v46 = vsel %vm294_vm3, %v291_v44, %v293_v43  ;;  %v296_v47 = vsel %vm294_vm3, %v293_v43, %v291_v44 }
  0xeb   : > { %255 = vst [vmem:[#allocation2] sm:$0x33] %v2563_v42  ;;  %v308_v48 = vmul.f32 %v301_v30, %v296_v47  ;;  %v309_v49 = vmul.f32 %v305_v31, %v295_v46  ;;  %v218_v46 = vld [vmem:[#allocation8] sm:$0x3] }
  0xec   : > { %v285_v52 = vrot.slane %v2564_v45, 6 }
  0xed   : > { %v2565_v54 = vpack.c.bf16 %v309_v49, %v308_v48  ;;  %v365_v55 = vpop.permute.xlu1 %364  ;;  %v363_v56 = vpop.permute.xlu0 %362 }
  0xee   : > { %287 = vst [vmem:[#allocation2] sm:$0xcc] %v285_v52  ;;  %v367_v57 = vsel %vm366_vm4, %v363_v56, %v365_v55  ;;  %v368_v58 = vsel %vm366_vm4, %v365_v55, %v363_v56 }
  0xef   : > { %318 = vst [vmem:[#allocation2 + $0x8] sm:$0x33] %v2565_v54  ;;  %v380_v59 = vmul.f32 %v373_v50, %v367_v57  ;;  %v381_v60 = vmul.f32 %v377_v51, %v368_v58 }
  0xf1   : > { %v2568_v4 = vpack.c.bf16 %v381_v60, %v380_v59  ;;  %v428_v5 = vpop.permute.xlu1 %427  ;;  %v426_v9 = vpop.permute.xlu0 %425 }
  0xf2   : > { %v430_v10 = vsel %vm429_vm5, %v426_v9, %v428_v5  ;;  %v431_v11 = vsel %vm429_vm5, %v428_v5, %v426_v9 }
  0xf3   : > { %v389_v13 = vrot.slane %v2568_v4, 6  ;;  %v443_v14 = vmul.f32 %v436_v61, %v430_v10  ;;  %v444_v15 = vmul.f32 %v440_v62, %v431_v11 }
  0xf5   : > { %391 = vst [vmem:[#allocation2 + $0x10] sm:$0xcc] %v389_v13  ;;  %v2570_v18 = vpack.c.bf16 %v444_v15, %v443_v14  ;;  %v397_v19 = vpop.permute.xlu1 %396  ;;  %v395_v20 = vpop.permute.xlu0 %394 }
  0xf6   : > { %v399_v21 = vsel %vm398_vm6, %v395_v20, %v397_v19  ;;  %v400_v22 = vsel %vm398_vm6, %v397_v19, %v395_v20  ;;  %v2710_v23 = vld [vmem:[#allocation2 + $0x4] ss:$8 sps:$4 sm:$0xff]   ;;  %v2712_v25 = vld [vmem:[#allocation2] ss:$8 sps:$4 sm:$0xff]  }
  0xf7   : > { %v452_v26 = vrot.slane %v2570_v18, 6  ;;  %v412_v27 = vmul.f32 %v405_v12, %v399_v21  ;;  %v413_v28 = vmul.f32 %v409_v16, %v400_v22  ;;  %527 = vmatprep.subr.bf16.mxu0 %v2710_v23 }
  0xf8   : > { %528 = vmatpush1.bf16.msra.mxu0 %v2712_v25 }
  0xf9   : > { %454 = vst [vmem:[#allocation2 + $0x18] sm:$0xcc] %v452_v26  ;;  %v2569_v30 = vpack.c.bf16 %v413_v28, %v412_v27  ;;  %v460_v31 = vpop.permute.xlu1 %459  ;;  %v458_v32 = vpop.permute.xlu0 %457 }
  0xfa   : > { %v462_v33 = vsel %vm461_vm7, %v458_v32, %v460_v31  ;;  %v463_v34 = vsel %vm461_vm7, %v460_v31, %v458_v32 }
  0xfb   : > { %422 = vst [vmem:[#allocation2 + $0x18] sm:$0x33] %v2569_v30  ;;  %v475_v35 = vmul.f32 %v468_v24, %v462_v33  ;;  %v476_v36 = vmul.f32 %v472_v29, %v463_v34  ;;  %v623_v30 = vld [vmem:[#allocation6 + $0x1] ss:$8 sm:$0x3] }
  0xfc   : > { %v488_v38 = vld [vmem:[#allocation2 + $0x10] sm:$0xff]  ;;  %v634_v31 = vrot.slane %v623_v30, %v3199_v7  ;;  %v638_v32 = vrot.slane %v623_v30, %v3201_v8  ;;  %v682_v33 = vld [vmem:[#allocation6 + $0x3] ss:$8 sm:$0x3] }
  0xfd   : > { %v2571_v37 = vpack.c.bf16 %v476_v36, %v475_v35  ;;  %v980_v36 = vld [vmem:[#allocation6 + $0x12] ss:$8 sm:$0x3] }
  0xff   : > { %485 = vst [vmem:[#allocation2 + $0x20] sm:$0x33] %v2571_v37 }
 0x102   : > { %v489_v39 = vld [vmem:[#allocation2 + $0x18] sm:$0xff] }
 0x103   : > { %v2469_v40 = vcombine.high %v488_v38, %v489_v39  ;;  %v2468_v41 = vcombine.low %v488_v38, %v489_v39  ;;  %v3341_v39 = vld [vmem:[#allocation6 + $0x14] ss:$8 sm:$0x3] }
 0x105   : > { %529 = vmatprep.subr.bf16.mxu0 %v2469_v40 }
 0x106   : > { %530 = vmatpush1.bf16.msra.mxu0 %v2468_v41  ;;  %v490_v42 = vld [vmem:[#allocation2 + $0x20] sm:$0x33] }
 0x107   : > { %v2471_v43 = vcombine.high %v490_v42, %v490_v42  ;;  %v2470_v44 = vcombine.low %v490_v42, %v490_v42  ;;  %v693_v42 = vrot.slane %v682_v33, %v3199_v7 }
 0x109   : > { %2472 = vmatprep.subr.msk.bf16.mxu0 %vm520_vm8, %v2471_v43  ;;  %v522_v45 = vsel %vm520_vm8, %v2470_v44, 0  ;;  %v697_v43 = vrot.slane %v682_v33, %v3201_v8  ;;  %v594_v44 = vld [vmem:[#allocation6] ss:$8 sm:$0x3] }
 0x10a   : > { %532 = vmatpush1.bf16.msra.mxu0 %v522_v45  ;;  %v992_v45 = vrot.slane %v980_v36, %v3199_v7 }
 0x10d   : > { %2473 = vmatmul.mubr.msk.bf16.vlgmr.msra.gmra.mrb[0].mxu0 %vm516_vm9, %v218_v46  ;;  %v996_v46 = vrot.slane %v980_v36, %v3201_v8 }
 0x10e   : > { %1272 = vmatprep.mubr.bf16.mxu0 %v2931_v3 }
 0x1e0   : > { %v561_v47 = vpop.f32.mrb[0].mxu0 }
 0x1e1   : > { %v574_v48 = vmul.f32 %v561_v47, %v561_v47  ;;  %v563_v49 = vpop.f32.mrb[1].mxu0  ;;  %v569_v50 = vsel %vm568_vm10, %v561_v47, 0.0 }
 0x1e2   : > { %v575_v51 = vmul.f32 %v563_v49, %v563_v49  ;;  %v565_v52 = vpop.f32.mrb[2].mxu0  ;;  %v570_v53 = vsel %vm568_vm10, %v563_v49, 0.0 }
 0x1e3   : > { %v566_v54 = vpop.f32.mrb[3].mxu0  ;;  %v571_v55 = vadd.f32 %v570_v53, %v569_v50  ;;  %v576_v56 = vsel %vm568_vm10, %v574_v48, 0.0  ;;  %v3352_v52 = vld [vmem:[#allocation6 + $0x13] ss:$8 sm:$0x3] }
 0x1e4   : > { %v577_v57 = vsel %vm568_vm10, %v575_v51, 0.0  ;;  %v1055_v51 = vrot.slane %v3341_v39, %v3199_v7 }
 0x1e5   : > { %572 = vadd.xlane.f32.xlu0 %v571_v55  ;;  %v578_v58 = vadd.f32 %v577_v57, %v576_v56  ;;  %v605_v55 = vrot.slane %v594_v44, %v3199_v7 }
 0x1e7   : > { %579 = vadd.xlane.f32.xlu1 %v578_v58 }
 0x1f8   : > { %983 = vrot.lane.b32.xlu1 %v3160_v1, %s2932_s7 }
 0x1fb   : > { %981 = vrot.lane.b32.xlu0 %v3152_v0, %s2932_s7 }
 0x1fc   : > { %1046 = vrot.lane.b32.xlu1 %v3160_v1, %s2933_s8 }
 0x1ff   : > { %1044 = vrot.lane.b32.xlu0 %v3152_v0, %s2933_s8 }
 0x200   : > { %952 = vrot.lane.b32.xlu1 %v3160_v1, %s2934_s23 }
 0x203   : > { %950 = vrot.lane.b32.xlu0 %v3152_v0, %s2934_s23 }
 0x204   : > { %1015 = vrot.lane.b32.xlu1 %v3160_v1, %s2935_s11 }
 0x207   : > { %1013 = vrot.lane.b32.xlu0 %v3152_v0, %s2935_s11 }
 0x208   : > { %1079 = vrot.lane.b32.xlu1 %v3160_v1, %s2936_s25 }
 0x20b   : > { %1077 = vrot.lane.b32.xlu0 %v3152_v0, %s2936_s25 }
 0x20c   : > { %1142 = vrot.lane.b32.xlu1 %v3160_v1, %s2937_s17 }
 0x20f   : > { %1140 = vrot.lane.b32.xlu0 %v3152_v0, %s2937_s17 }
 0x272   : > { %v573_v59 = vpop.xlane.xlu0 %572 }
 0x273   : > { %v581_v60 = vmul.f32 0.00390625, %v573_v59  ;;  %v609_v59 = vrot.slane %v594_v44, %v3201_v8 }
 0x274   : > { %v580_v61 = vpop.xlane.xlu1 %579 }
 0x275   : > { %v582_v62 = vmul.f32 0.00390625, %v580_v61  ;;  %v583_v63 = vmul.f32 %v581_v60, %v581_v60  ;;  %v586_v10 = vsub.f32 %v561_v47, %v581_v60  ;;  %v587_v11 = vsub.f32 %v563_v49, %v581_v60  ;;  %v949_v47 = vld [vmem:[#allocation6 + $0x11] ss:$8 sm:$0x3] }
 0x276   : > { %v982_v19 = vpop.permute.xlu0 %981  ;;  %v653_v60 = vld [vmem:[#allocation6 + $0x2] ss:$8 sm:$0x3]  ;;  %v1059_v61 = vrot.slane %v3341_v39, %v3201_v8 }
 0x277   : > { %v584_v4 = vsub.f32 %v582_v62, %v583_v63  ;;  %v961_v62 = vrot.slane %v949_v47, %v3199_v7  ;;  %v965_v63 = vrot.slane %v949_v47, %v3201_v8 }
 0x278   : > { %v984_v18 = vpop.permute.xlu1 %983 }
 0x279   : > { %v585_v5 = vmax.f32 %v584_v4, 0.0  ;;  %v986_v4 = vsel %vm985_vm11, %v982_v19, %v984_v18 }
 0x27a   : > { %v3317_v21 = vpop.permute.xlu0 %1044  ;;  %v1000_v33 = vmul.f32 %v996_v46, %v986_v4 }
 0x27b   : > { %v588_v9 = vadd.f32 1e-05, %v585_v5  ;;  %v987_v5 = vsel %vm985_vm11, %v984_v18, %v982_v19 }
 0x27c   : > { %v3315_v20 = vpop.permute.xlu1 %1046 }
 0x27d   : > { %2745 = vrsqrt.f32 %v588_v9  ;;  %v1024_v9 = vrot.slane %v3352_v52, %v3199_v7  ;;  %v1049_v36 = vsel %vm1048_vm12, %v3317_v21, %v3315_v20 }
 0x27e   : > { %v3321_v23 = vpop.permute.xlu0 %950 }
 0x280   : > { %v3319_v22 = vpop.permute.xlu1 %952 }
 0x282   : > { %v3325_v25 = vpop.permute.xlu0 %1013 }
 0x284   : > { %v3323_v24 = vpop.permute.xlu1 %1015 }
 0x286   : > { %v3329_v27 = vpop.permute.xlu0 %1077 }
 0x287   : > { %v2746_v12 = vpop.eup %2745 }
 0x288   : > { %v590_v13 = vmul.f32 %v2746_v12, %v586_v10  ;;  %v591_v14 = vmul.f32 %v2746_v12, %v587_v11  ;;  %v3327_v26 = vpop.permute.xlu1 %1079  ;;  %v1076_v10 = vld [vmem:[#allocation6 + $0x16] ss:$8 sm:$0x3] }
 0x28a   : > { %v592_v15 = vmax.f32 %v590_v13, 0.0  ;;  %v593_v16 = vmax.f32 %v591_v14, 0.0  ;;  %v3333_v29 = vpop.permute.xlu0 %1140  ;;  %v1028_v14 = vrot.slane %v3352_v52, %v3201_v8 }
 0x28c   : > { %v2576_v17 = vpack.c.bf16 %v593_v16, %v592_v15  ;;  %626 = vrot.lane.b32.xlu1 %v593_v16, %s2924_s24  ;;  %624 = vrot.lane.b32.xlu0 %v592_v15, %s2924_s24  ;;  %v3331_v28 = vpop.permute.xlu1 %1142  ;;  %s2940_s24 = smov 64  }
 0x28e   : > { %720 = vst [vmem:[#allocation2 + $0x10] sm:$0x33] %v2576_v17  ;;  %v664_v17 = vrot.slane %v653_v60, %v3199_v7 }
 0x290   : > { %685 = vrot.lane.b32.xlu1 %v593_v16, %s2923_s20  ;;  %683 = vrot.lane.b32.xlu0 %v592_v15, %s2923_s20  ;;  %s2939_s20 = smov 94  }
 0x294   : > { %597 = vrot.lane.b32.xlu1 %v593_v16, %s2925_s18  ;;  %595 = vrot.lane.b32.xlu0 %v592_v15, %s2925_s18  ;;  %s2941_s18 = smov 4  }
 0x298   : > { %656 = vrot.lane.b32.xlu1 %v593_v16, %s2926_s27  ;;  %654 = vrot.lane.b32.xlu0 %v592_v15, %s2926_s27  ;;  %s2942_s27 = smov 68  }
 0x29c   : > { %724 = vrot.lane.b32.xlu1 %v593_v16, %s2927_s28  ;;  %722 = vrot.lane.b32.xlu0 %v592_v15, %s2927_s28  ;;  %s2943_s28 = smov 60  }
 0x2a0   : > { %783 = vrot.lane.b32.xlu1 %v593_v16, %s2928_s22  ;;  %781 = vrot.lane.b32.xlu0 %v592_v15, %s2928_s22  ;;  %s2944_s22 = smov 124  }
 0x2a4   : > { %754 = vrot.lane.b32.xlu1 %v593_v16, %s2929_s4  ;;  %752 = vrot.lane.b32.xlu0 %v592_v15, %s2929_s4  ;;  %s215_s4 = scalar_lea.vmem [#allocation9], %s2453_s26 }
 0x2a8   : > { %813 = vrot.lane.b32.xlu1 %v593_v16, %s2930_s5  ;;  %811 = vrot.lane.b32.xlu0 %v592_v15, %s2930_s5  ;;  %s2355_s5 = sshll.u32 %s215_s4, 4  ;;  %s3755_s5 = int_to_ptr.vmem [resolvable:$true] %s2355_s5 }
 0x2ac   : > { %1111 = vrot.lane.b32.xlu1 %v3160_v1, %s2938_s29  ;;  %1109 = vrot.lane.b32.xlu0 %v3152_v0, %s2938_s29 }
 0x2b0   : > { %1174 = vrot.lane.b32.xlu1 %v3160_v1, %s2939_s20  ;;  %1172 = vrot.lane.b32.xlu0 %v3152_v0, %s2939_s20 }
 0x2fe   : > { %v627_v34 = vpop.permute.xlu1 %626  ;;  %v625_v35 = vpop.permute.xlu0 %624 }
 0x2ff   : > { %v628_v37 = vsel %vm262_vm2, %v625_v35, %v627_v34  ;;  %v629_v38 = vsel %vm262_vm2, %v627_v34, %v625_v35  ;;  %v1088_v34 = vrot.slane %v1076_v10, %v3199_v7  ;;  %v721_v35 = vld [vmem:[#allocation6 + $0x5] ss:$8 sm:$0x3]  ;;  %vm1176_vm2 = vcmp.lt.s32.totalorder %v3197_v6, 94 }
 0x300   : > { %v641_v40 = vmul.f32 %v634_v31, %v629_v38  ;;  %v642_v41 = vmul.f32 %v638_v32, %v628_v37  ;;  %v668_v31 = vrot.slane %v653_v60, %v3201_v8  ;;  %v999_v32 = vmul.f32 %v992_v45, %v987_v5 }
 0x301   : > { %v1050_v37 = vsel %vm1048_vm12, %v3315_v20, %v3317_v21  ;;  %v956_v38 = vsel %vm954_vm13, %v3319_v22, %v3321_v23  ;;  %v732_v46 = vrot.slane %v721_v35, %v3199_v7  ;;  %v736_v47 = vrot.slane %v721_v35, %v3201_v8 }
 0x302   : > { %v2573_v48 = vpack.c.bf16 %v642_v41, %v641_v40  ;;  %v686_v49 = vpop.permute.xlu1 %685  ;;  %v684_v50 = vpop.permute.xlu0 %683  ;;  %v968_v52 = vmul.f32 %v961_v62, %v956_v38 }
 0x303   : > { %v687_v53 = vsel %vm325_vm0, %v684_v50, %v686_v49  ;;  %v688_v54 = vsel %vm325_vm0, %v686_v49, %v684_v50  ;;  %v1062_v49 = vmul.f32 %v1055_v51, %v1050_v37  ;;  %v1063_v50 = vmul.f32 %v1059_v61, %v1049_v36 }
 0x304   : > { %v650_v56 = vrot.slane %v2573_v48, 6  ;;  %v700_v57 = vmul.f32 %v693_v42, %v688_v54  ;;  %v701_v58 = vmul.f32 %v697_v43, %v687_v53  ;;  %v955_v42 = vsel %vm954_vm13, %v3321_v23, %v3319_v22  ;;  %v780_v22 = vld [vmem:[#allocation6 + $0x7] ss:$8 sm:$0x3] }
 0x305   : > { %v1092_v43 = vrot.slane %v1076_v10, %v3201_v8  ;;  %v2582_v48 = vpack.c.bf16 %v1000_v33, %v999_v32  ;;  %v969_v23 = vmul.f32 %v965_v63, %v955_v42  ;;  %v1018_v53 = vsel %vm1017_vm14, %v3325_v25, %v3323_v24  ;;  %v751_v63 = vld [vmem:[#allocation6 + $0x6] ss:$8 sm:$0x3] }
 0x306   : > { %652 = vst [vmem:[#allocation2] sm:$0xcc] %v650_v56  ;;  %v2575_v11 = vpack.c.bf16 %v701_v58, %v700_v57  ;;  %v598_v12 = vpop.permute.xlu1 %597  ;;  %v596_v13 = vpop.permute.xlu0 %595  ;;  %v1019_v54 = vsel %vm1017_vm14, %v3323_v24, %v3325_v25  ;;  %v1082_v51 = vsel %vm1081_vm15, %v3329_v27, %v3327_v26  ;;  %v1083_v58 = vsel %vm1081_vm15, %v3327_v26, %v3329_v27 }
 0x307   : > { %v599_v15 = vsel %vm231_vm1, %v596_v13, %v598_v12  ;;  %v600_v16 = vsel %vm231_vm1, %v598_v12, %v596_v13  ;;  %v791_v61 = vrot.slane %v780_v22, %v3199_v7  ;;  %v795_v62 = vrot.slane %v780_v22, %v3201_v8  ;;  %v1139_v13 = vld [vmem:[#allocation6 + $0x20] ss:$8 sm:$0x3] }
 0x308   : > { %v709_v18 = vrot.slane %v2575_v11, 6  ;;  %v612_v19 = vmul.f32 %v605_v55, %v600_v16  ;;  %v613_v30 = vmul.f32 %v609_v59, %v599_v15  ;;  %v1008_v4 = vrot.slane %v2582_v48, 6 }
 0x309   : > { %v2584_v5 = vpack.c.bf16 %v1063_v50, %v1062_v49  ;;  %v1031_v10 = vmul.f32 %v1024_v9, %v1019_v54  ;;  %v1032_v11 = vmul.f32 %v1028_v14, %v1018_v53  ;;  %v2581_v12 = vpack.c.bf16 %v969_v23, %v968_v52  ;;  %v1108_v52 = vld [vmem:[#allocation6 + $0x17] ss:$8 sm:$0x3] }
 0x30a   : > { %711 = vst [vmem:[#allocation2 + $0x8] sm:$0xcc] %v709_v18  ;;  %v2572_v39 = vpack.c.bf16 %v613_v30, %v612_v19  ;;  %v657_v40 = vpop.permute.xlu1 %656  ;;  %v655_v41 = vpop.permute.xlu0 %654  ;;  %v1095_v26 = vmul.f32 %v1088_v34, %v1082_v51  ;;  %v1096_v27 = vmul.f32 %v1092_v43, %v1083_v58  ;;  %vm1144_vm0 = vcmp.lt.s32.totalorder %v3197_v6, 96  ;;  %v810_v34 = vld [vmem:[#allocation6 + $0x10] ss:$8 sm:$0x3] }
 0x30b   : > { %v658_v44 = vsel %vm294_vm3, %v655_v41, %v657_v40  ;;  %v659_v20 = vsel %vm294_vm3, %v657_v40, %v655_v41  ;;  %v766_v33 = vrot.slane %v751_v63, %v3201_v8  ;;  %v1071_v35 = vrot.slane %v2584_v5, 6 }
 0x30c   : > { %622 = vst [vmem:[#allocation2] sm:$0x33] %v2572_v39  ;;  %v671_v21 = vmul.f32 %v664_v17, %v659_v20  ;;  %v672_v45 = vmul.f32 %v668_v31, %v658_v44  ;;  %v762_v31 = vrot.slane %v751_v63, %v3199_v7  ;;  %v2583_v36 = vpack.c.bf16 %v1032_v11, %v1031_v10 }
 0x30d   : > { %v1151_v37 = vrot.slane %v1139_v13, %v3199_v7  ;;  %v1155_v38 = vrot.slane %v1139_v13, %v3201_v8  ;;  %v2585_v39 = vpack.c.bf16 %v1096_v27, %v1095_v26  ;;  %v1145_v40 = vsel %vm1144_vm0, %v3333_v29, %v3331_v28 }
 0x30e   : > { %v2574_v55 = vpack.c.bf16 %v672_v45, %v671_v21  ;;  %v725_v56 = vpop.permute.xlu1 %724  ;;  %v723_v57 = vpop.permute.xlu0 %722  ;;  %v1146_v41 = vsel %vm1144_vm0, %v3331_v28, %v3333_v29  ;;  %vm1113_vm1 = vcmp.lt.s32.totalorder %v3197_v6, 98  ;;  %vm1697_vm3 = vcmp.lt.s32.totalorder %v3197_v6, 64 }
 0x30f   : > { %v726_v59 = vsel %vm366_vm4, %v723_v57, %v725_v56  ;;  %v727_v60 = vsel %vm366_vm4, %v725_v56, %v723_v57  ;;  %v1158_v22 = vmul.f32 %v1151_v37, %v1145_v40  ;;  %v1159_v23 = vmul.f32 %v1155_v38, %v1146_v41 }
 0x310   : > { %681 = vst [vmem:[#allocation2 + $0x8] sm:$0x33] %v2574_v55  ;;  %v739_v24 = vmul.f32 %v732_v46, %v726_v59  ;;  %v740_v25 = vmul.f32 %v736_v47, %v727_v60  ;;  %v821_v46 = vrot.slane %v810_v34, %v3199_v7  ;;  %v825_v47 = vrot.slane %v810_v34, %v3201_v8 }
 0x311   : > { %v1104_v56 = vrot.slane %v2585_v39, 6  ;;  %v1120_v60 = vrot.slane %v1108_v52, %v3199_v7  ;;  %vm1760_vm4 = vcmp.lt.s32.totalorder %v3197_v6, 4 }
 0x312   : > { %v2577_v15 = vpack.c.bf16 %v740_v25, %v739_v24  ;;  %v784_v16 = vpop.permute.xlu1 %783  ;;  %v782_v17 = vpop.permute.xlu0 %781  ;;  %v1124_v24 = vrot.slane %v1108_v52, %v3201_v8 }
 0x313   : > { %v839_v18 = vld [vmem:[#allocation2] sm:$0xff]  ;;  %v785_v19 = vsel %vm429_vm5, %v782_v17, %v784_v16  ;;  %v786_v30 = vsel %vm429_vm5, %v784_v16, %v782_v17  ;;  %vm1666_vm5 = vcmp.lt.s32.totalorder %v3197_v6, 68 }
 0x314   : > { %978 = vst [vmem:[#allocation2] sm:$0x33] %v2581_v12  ;;  %1010 = vst [vmem:[#allocation2] sm:$0xcc] %v1008_v4  ;;  %v748_v9 = vrot.slane %v2577_v15, 6  ;;  %v798_v14 = vmul.f32 %v791_v61, %v785_v19  ;;  %v799_v32 = vmul.f32 %v795_v62, %v786_v30  ;;  %v2587_v62 = vpack.c.bf16 %v1159_v23, %v1158_v22 }
 0x315   : > { %v1171_v61 = vld [vmem:[#allocation6 + $0x21] ss:$8 sm:$0x3] }
 0x316   : > { %750 = vst [vmem:[#allocation2 + $0x10] sm:$0xcc] %v748_v9  ;;  %v2579_v42 = vpack.c.bf16 %v799_v32, %v798_v14  ;;  %v755_v43 = vpop.permute.xlu1 %754  ;;  %v753_v44 = vpop.permute.xlu0 %752  ;;  %v1183_v15 = vrot.slane %v1171_v61, %v3199_v7  ;;  %v1187_v16 = vrot.slane %v1171_v61, %v3201_v8  ;;  %v1167_v17 = vrot.slane %v2587_v62, 6 }
 0x317   : > { %v840_v20 = vld [vmem:[#allocation2 + $0x8] sm:$0xff]  ;;  %v756_v21 = vsel %vm398_vm6, %v753_v44, %v755_v43  ;;  %v757_v45 = vsel %vm398_vm6, %v755_v43, %v753_v44  ;;  %vm1729_vm6 = vcmp.lt.s32.totalorder %v3197_v6, 60 }
 0x318   : > { %1041 = vst [vmem:[#allocation2 + $0x8] sm:$0x33] %v2583_v36  ;;  %1073 = vst [vmem:[#allocation2 + $0x8] sm:$0xcc] %v1071_v35  ;;  %v807_v48 = vrot.slane %v2579_v42, 6  ;;  %v769_v49 = vmul.f32 %v762_v31, %v756_v21  ;;  %v770_v28 = vmul.f32 %v766_v33, %v757_v45  ;;  %v2484_v29 = vcombine.high %v839_v18, %v840_v20 }
 0x319   : > { %v2483_v50 = vcombine.low %v839_v18, %v840_v20  ;;  %v945_v45 = vld [vmem:[#allocation8 + $0x4] sm:$0x3] }
 0x31a   : > { %809 = vst [vmem:[#allocation2 + $0x18] sm:$0xcc] %v807_v48  ;;  %v2578_v53 = vpack.c.bf16 %v770_v28, %v769_v49  ;;  %v814_v54 = vpop.permute.xlu1 %813  ;;  %878 = vmatprep.subr.bf16.mxu1 %v2484_v29  ;;  %v812_v55 = vpop.permute.xlu0 %811 }
 0x31b   : > { %v815_v57 = vsel %vm461_vm7, %v812_v55, %v814_v54  ;;  %v816_v51 = vsel %vm461_vm7, %v814_v54, %v812_v55  ;;  %879 = vmatpush1.bf16.msra.mxu1 %v2483_v50  ;;  %vm1793_vm7 = vcmp.lt.s32.totalorder %v3197_v6, 124 }
 0x31c   : > { %779 = vst [vmem:[#allocation2 + $0x18] sm:$0x33] %v2578_v53  ;;  %v828_v58 = vmul.f32 %v821_v46, %v815_v57  ;;  %v829_v59 = vmul.f32 %v825_v47, %v816_v51 }
 0x31d   : > { %v841_v25 = vld [vmem:[#allocation2 + $0x10] sm:$0xff] }
 0x31e   : > { %1106 = vst [vmem:[#allocation2 + $0x10] sm:$0xcc] %v1104_v56  ;;  %1074 = vst [vmem:[#allocation2 + $0x10] sm:$0x33] %v3168_v2  ;;  %v2580_v63 = vpack.c.bf16 %v829_v59, %v828_v58  ;;  %v1112_v4 = vpop.permute.xlu1 %1111  ;;  %v1110_v5 = vpop.permute.xlu0 %1109 }
 0x31f   : > { %v1114_v10 = vsel %vm1113_vm1, %v1110_v5, %v1112_v4  ;;  %v1115_v11 = vsel %vm1113_vm1, %v1112_v4, %v1110_v5  ;;  %v2715_v12 = vld [vmem:[#allocation2 + $0x4] ss:$8 sps:$4 sm:$0xff]   ;;  %v2717_v26 = vld [vmem:[#allocation2] ss:$8 sps:$4 sm:$0xff]  }
 0x320   : > { %838 = vst [vmem:[#allocation2 + $0x20] sm:$0x33] %v2580_v63  ;;  %v1127_v27 = vmul.f32 %v1120_v60, %v1114_v10  ;;  %v1128_v13 = vmul.f32 %v1124_v24, %v1115_v11  ;;  %1240 = vmatprep.subr.bf16.mxu0 %v2715_v12  ;;  %v220_v11 = vld [vmem:[#allocation8 + $0x2] sm:$0x3]  ;;  %v3515_v12 = vld [vmem:[%s3141_s30] sm:$0xff]  ;;  %s2615_s30 = sshll.u32 %s2987_s16, 7 }
 0x321   : > { %1241 = vmatpush1.bf16.msra.mxu0 %v2717_v26  ;;  %s2945_s16 = smov [#allocation9]  }
 0x322   : > { %v2586_v18 = vpack.c.bf16 %v1128_v13, %v1127_v27  ;;  %v1175_v19 = vpop.permute.xlu1 %1174  ;;  %v1173_v30 = vpop.permute.xlu0 %1172  ;;  %s2848_s26 = sshll.u32 %s2945_s16, 4  ;;  %s2849_s26 = int_to_ptr.vmem [resolvable:$false] %s2848_s26 }
 0x323   : > { %v842_v31 = vld [vmem:[#allocation2 + $0x18] sm:$0xff]  ;;  %v1177_v9 = vsel %vm1176_vm2, %v1173_v30, %v1175_v19  ;;  %v1178_v14 = vsel %vm1176_vm2, %v1175_v19, %v1173_v30  ;;  %v1335_v30 = vld [vmem:[#allocation6 + $0x12] ss:$8 sm:$0x3]  ;;  %p2851_p5 = scmp.lt.s32.totalorder %s3755_s5, %s2849_s26 }
 0x324   : > { %1137 = vst [vmem:[#allocation2 + $0x18] sm:$0x33] %v2586_v18  ;;  %1169 = vst [vmem:[#allocation2 + $0x18] sm:$0xcc] %v1167_v17  ;;  %v1190_v32 = vmul.f32 %v1183_v15, %v1177_v9  ;;  %v1191_v33 = vmul.f32 %v1187_v16, %v1178_v14  ;;  %v2486_v34 = vcombine.high %v841_v25, %v842_v31 }
 0x325   : > { %v2485_v35 = vcombine.low %v841_v25, %v842_v31  ;;  %v1346_v31 = vrot.slane %v1335_v30, %v3199_v7  ;;  %v1350_v9 = vrot.slane %v1335_v30, %v3201_v8  ;;  %v1394_v14 = vld [vmem:[#allocation6 + $0x14] ss:$8 sm:$0x3] }
 0x326   : > { %v2588_v36 = vpack.c.bf16 %v1191_v33, %v1190_v32  ;;  %880 = vmatprep.subr.bf16.mxu1 %v2486_v34 }
 0x327   : > { %881 = vmatpush1.bf16.msra.mxu1 %v2485_v35  ;;  %v843_v37 = vld [vmem:[#allocation2 + $0x20] sm:$0x33] }
 0x328   : > { %v2488_v38 = vcombine.high %v843_v37, %v843_v37  ;;  %1200 = vst [vmem:[#allocation2 + $0x20] sm:$0x33] %v2588_v36  ;;  %v2487_v39 = vcombine.low %v843_v37, %v843_v37 }
 0x32a   : > { %2489 = vmatprep.subr.msk.bf16.mxu1 %vm520_vm8, %v2488_v38  ;;  %v873_v40 = vsel %vm520_vm8, %v2487_v39, 0  ;;  %v1405_v38 = vrot.slane %v1394_v14, %v3199_v7  ;;  %v1409_v39 = vrot.slane %v1394_v14, %v3201_v8 }
 0x32b   : > { %883 = vmatpush1.bf16.msra.mxu1 %v873_v40  ;;  %v2719_v41 = vld [vmem:[#allocation2 + $0x14] ss:$8 sps:$4 sm:$0xff]   ;;  %v2721_v42 = vld [vmem:[#allocation2 + $0x10] ss:$8 sps:$4 sm:$0xff]  }
 0x32c   : > { %1242 = vmatprep.subr.bf16.mxu0 %v2719_v41  ;;  %v1306_v40 = vld [vmem:[#allocation6 + $0x11] ss:$8 sm:$0x3] }
 0x32d   : > { %1243 = vmatpush1.bf16.msra.mxu0 %v2721_v42 }
 0x32e   : > { %2490 = vmatmul.mubr.msk.bf16.vlgmr.msra.gmra.mrb[0].mxu1 %vm516_vm9, %v220_v11 }
 0x32f   : > { %v1205_v43 = vld [vmem:[#allocation2 + $0x20] sm:$0x33]  ;;  %1622 = vmatprep.mubr.bf16.mxu1 %v2931_v3 }
 0x330   : > { %v2504_v44 = vcombine.high %v1205_v43, %v1205_v43  ;;  %v2503_v20 = vcombine.low %v1205_v43, %v1205_v43 }
 0x332   : > { %2505 = vmatprep.subr.msk.bf16.mxu0 %vm520_vm8, %v2504_v44  ;;  %v1235_v21 = vsel %vm520_vm8, %v2503_v20, 0  ;;  %v1692_v44 = vld [vmem:[#allocation6 + $0x23] ss:$8 sm:$0x3] }
 0x333   : > { %1245 = vmatpush1.bf16.msra.mxu0 %v1235_v21  ;;  %v1755_v20 = vld [vmem:[#allocation6 + $0x25] ss:$8 sm:$0x3] }
 0x336   : > { %2506 = vmatmul.mubr.msk.bf16.vlgmr.msra.gmra.mrb[4].mxu0 %vm516_vm9, %v945_v45 }
 0x337   : > { %1963 = vmatprep.mubr.bf16.mxu0 %v2931_v3 }
 0x409   : > { %v1274_v46 = vpop.f32.mrb[4].mxu0 }
 0x40a   : > { %v1286_v47 = vmul.f32 %v1274_v46, %v1274_v46  ;;  %v1276_v48 = vpop.f32.mrb[5].mxu0  ;;  %v1281_v49 = vsel %vm568_vm10, %v1274_v46, 0.0 }
 0x40b   : > { %v1287_v28 = vmul.f32 %v1276_v48, %v1276_v48  ;;  %v1278_v29 = vpop.f32.mrb[6].mxu0  ;;  %v1282_v50 = vsel %vm568_vm10, %v1276_v48, 0.0 }
 0x40c   : > { %v1279_v52 = vpop.f32.mrb[7].mxu0  ;;  %v1283_v22 = vadd.f32 %v1282_v50, %v1281_v49  ;;  %v1288_v23 = vsel %vm568_vm10, %v1286_v47, 0.0  ;;  %v1365_v29 = vld [vmem:[#allocation6 + $0x13] ss:$8 sm:$0x3]  ;;  %v1704_v50 = vrot.slane %v1692_v44, %v3199_v7 }
 0x40d   : > { %v1289_v53 = vsel %vm568_vm10, %v1287_v28, 0.0  ;;  %v1321_v28 = vrot.slane %v1306_v40, %v3201_v8  ;;  %v1708_v52 = vrot.slane %v1692_v44, %v3201_v8 }
 0x40e   : > { %1284 = vadd.xlane.f32.xlu0 %v1283_v22  ;;  %v1290_v54 = vadd.f32 %v1289_v53, %v1288_v23  ;;  %v1661_v22 = vld [vmem:[#allocation6 + $0x22] ss:$8 sm:$0x3] }
 0x410   : > { %1291 = vadd.xlane.f32.xlu1 %v1290_v54 }
 0x421   : > { %1695 = vrot.lane.b32.xlu1 %v3160_v1, %s2940_s24 }
 0x424   : > { %1693 = vrot.lane.b32.xlu0 %v3152_v0, %s2940_s24 }
 0x425   : > { %1758 = vrot.lane.b32.xlu1 %v3160_v1, %s2941_s18 }
 0x428   : > { %1756 = vrot.lane.b32.xlu0 %v3152_v0, %s2941_s18 }
 0x429   : > { %1664 = vrot.lane.b32.xlu1 %v3160_v1, %s2942_s27 }
 0x42c   : > { %1662 = vrot.lane.b32.xlu0 %v3152_v0, %s2942_s27 }
 0x42d   : > { %1727 = vrot.lane.b32.xlu1 %v3160_v1, %s2943_s28 }
 0x430   : > { %1725 = vrot.lane.b32.xlu0 %v3152_v0, %s2943_s28 }
 0x49b   : > { %v1285_v55 = vpop.xlane.xlu0 %1284 }
 0x49c   : > { %v1293_v56 = vmul.f32 0.00390625, %v1285_v55  ;;  %v1767_v55 = vrot.slane %v1755_v20, %v3199_v7 }
 0x49d   : > { %v1292_v57 = vpop.xlane.xlu1 %1291 }
 0x49e   : > { %v1294_v51 = vmul.f32 0.00390625, %v1292_v57  ;;  %v1295_v58 = vmul.f32 %v1293_v56, %v1293_v56  ;;  %v1298_v25 = vsub.f32 %v1274_v46, %v1293_v56  ;;  %v1299_v61 = vsub.f32 %v1276_v48, %v1293_v56 }
 0x49f   : > { %v1694_v27 = vpop.permute.xlu0 %1693  ;;  %v1317_v46 = vrot.slane %v1306_v40, %v3199_v7 }
 0x4a0   : > { %v1296_v59 = vsub.f32 %v1294_v51, %v1295_v58  ;;  %v1376_v51 = vrot.slane %v1365_v29, %v3199_v7  ;;  %v1724_v58 = vld [vmem:[#allocation6 + $0x24] ss:$8 sm:$0x3] }
 0x4a1   : > { %v1696_v26 = vpop.permute.xlu1 %1695  ;;  %v1736_v14 = vrot.slane %v1724_v58, %v3199_v7 }
 0x4a2   : > { %v1297_v60 = vmax.f32 %v1296_v59, 0.0 }
 0x4a3   : > { %v1757_v15 = vpop.permute.xlu0 %1756 }
 0x4a4   : > { %v1300_v24 = vadd.f32 1e-05, %v1297_v60 }
 0x4a5   : > { %v1759_v13 = vpop.permute.xlu1 %1758 }
 0x4a6   : > { %2747 = vrsqrt.f32 %v1300_v24  ;;  %v1762_v11 = vsel %vm1760_vm4, %v1759_v13, %v1757_v15 }
 0x4a7   : > { %v3521_v17 = vpop.permute.xlu0 %1662 }
 0x4a9   : > { %v3519_v16 = vpop.permute.xlu1 %1664 }
 0x4aa   : > { %v3588_v40 = vsel %vm1666_vm5, %v3519_v16, %v3521_v17 }
 0x4ab   : > { %v3525_v19 = vpop.permute.xlu0 %1725 }
 0x4ad   : > { %v3523_v18 = vpop.permute.xlu1 %1727 }
 0x4b0   : > { %v2748_v62 = vpop.eup %2747 }
 0x4b1   : > { %v1302_v63 = vmul.f32 %v2748_v62, %v1298_v25  ;;  %v1303_v4 = vmul.f32 %v2748_v62, %v1299_v61  ;;  %v1380_v25 = vrot.slane %v1365_v29, %v3201_v8  ;;  %v3555_v61 = vsel %vm1697_vm3, %v1694_v27, %v1696_v26 }
 0x4b2   : > { %v1771_v62 = vrot.slane %v1755_v20, %v3201_v8  ;;  %v3595_v20 = vsel %vm1729_vm6, %v3525_v19, %v3523_v18 }
 0x4b3   : > { %v1304_v5 = vmax.f32 %v1302_v63, 0.0  ;;  %v1305_v10 = vmax.f32 %v1303_v4, 0.0  ;;  %v1673_v63 = vrot.slane %v1661_v22, %v3199_v7  ;;  %v1677_v4 = vrot.slane %v1661_v22, %v3201_v8 }
 0x4b5   : > { %1338 = vrot.lane.b32.xlu1 %v1305_v10, %s2932_s7  ;;  %1336 = vrot.lane.b32.xlu0 %v1304_v5, %s2932_s7  ;;  %v2593_v0 = vpack.c.bf16 %v1305_v10, %v1304_v5 }
 0x4b7   : > { %1432 = vst [vmem:[#allocation2 + $0x10] sm:$0x33] %v2593_v0  ;;  %v1761_v0 = vsel %vm1760_vm4, %v1757_v15, %v1759_v13 }
 0x4b9   : > { %1397 = vrot.lane.b32.xlu1 %v1305_v10, %s2933_s8  ;;  %1395 = vrot.lane.b32.xlu0 %v1304_v5, %s2933_s8 }
 0x4bd   : > { %1309 = vrot.lane.b32.xlu1 %v1305_v10, %s2934_s23  ;;  %1307 = vrot.lane.b32.xlu0 %v1304_v5, %s2934_s23  ;;  %s3753_s23 = scalar_lea.hbm %s3800_s3, %s2615_s30 }
 0x4c1   : > { %1368 = vrot.lane.b32.xlu1 %v1305_v10, %s2935_s11  ;;  %1366 = vrot.lane.b32.xlu0 %v1304_v5, %s2935_s11  ;;  %s2341_s11 = scalar_lea.sflag [#allocation5], %s3135_s21 }
 0x4c5   : > { %1436 = vrot.lane.b32.xlu1 %v1305_v10, %s2936_s25  ;;  %1434 = vrot.lane.b32.xlu0 %v1304_v5, %s2936_s25  ;;  %s2844_s25 = scalar_lea.vmem %s3755_s5, 128 }
 0x4c6   : > { %p2845_p11 = scmp.ne.s32.totalorder %s3755_s5, %s2844_s25 }
 0x4c8   : > { %p2846_p1 = pnand %p2845_p11, %p3814_p0 }
 0x4c9   : > { %1495 = vrot.lane.b32.xlu1 %v1305_v10, %s2937_s17  ;;  %1493 = vrot.lane.b32.xlu0 %v1304_v5, %s2937_s17  ;;  %s2850_s17 = scalar_lea.vmem %s2849_s26, 256 }
 0x4ca   : > { %p2847_p3 = pneg %p2846_p1  ;;  %p2852_p9 = scmp.lt.s32.totalorder %s2850_s17, %s2844_s25 }
 0x4cc   : > { %p2853_p12 = por %p2852_p9, %p2851_p5 }
 0x4cd   : > { %1466 = vrot.lane.b32.xlu1 %v1305_v10, %s2938_s29  ;;  %1464 = vrot.lane.b32.xlu0 %v1304_v5, %s2938_s29 }
 0x4ce   : > { %p2854_p2 = pnand %p2853_p12, %p2847_p3 }
 0x4d1   : > { %1525 = vrot.lane.b32.xlu1 %v1305_v10, %s2939_s20  ;;  %1523 = vrot.lane.b32.xlu0 %v1304_v5, %s2939_s20  ;;  %v1433_v5 = vld [vmem:[#allocation6 + $0x16] ss:$8 sm:$0x3]  ;;  %v3562_v10 = vsel %vm1697_vm3, %v1696_v26, %v1694_v27 }
 0x4d2   : > { %v1448_v13 = vrot.slane %v1433_v5, %v3201_v8  ;;  %v1711_v15 = vmul.f32 %v1704_v50, %v3562_v10  ;;  %v1680_v50 = vmul.f32 %v1673_v63, %v3588_v40 }
 0x4d5   : > { %1791 = vrot.lane.b32.xlu1 %v3160_v1, %s2944_s22  ;;  %1789 = vrot.lane.b32.xlu0 %v3515_v12, %s2944_s22 }
 0x527   : > { %v1339_v32 = vpop.permute.xlu1 %1338  ;;  %v1337_v33 = vpop.permute.xlu0 %1336 }
 0x528   : > { %v1340_v34 = vsel %vm985_vm11, %v1337_v33, %v1339_v32  ;;  %v1341_v35 = vsel %vm985_vm11, %v1339_v32, %v1337_v33 }
 0x529   : > { %v1353_v36 = vmul.f32 %v1346_v31, %v1341_v35  ;;  %v1354_v37 = vmul.f32 %v1350_v9, %v1340_v34  ;;  %v1444_v34 = vrot.slane %v1433_v5, %v3199_v7  ;;  %v1712_v35 = vmul.f32 %v1708_v52, %v3555_v61  ;;  %v1820_v5 = vld [vmem:[#allocation6 + $0x30] ss:$8 sm:$0x3] }
 0x52b   : > { %v2590_v41 = vpack.c.bf16 %v1354_v37, %v1353_v36  ;;  %v1398_v42 = vpop.permute.xlu1 %1397  ;;  %v1396_v43 = vpop.permute.xlu0 %1395  ;;  %v1774_v36 = vmul.f32 %v1767_v55, %v1762_v11  ;;  %v1775_v37 = vmul.f32 %v1771_v62, %v1761_v0 }
 0x52c   : > { %v1399_v21 = vsel %vm1048_vm12, %v1396_v43, %v1398_v42  ;;  %v1400_v45 = vsel %vm1048_vm12, %v1398_v42, %v1396_v43 }
 0x52d   : > { %v1362_v47 = vrot.slane %v2590_v41, 6  ;;  %v1412_v48 = vmul.f32 %v1405_v38, %v1400_v45  ;;  %v1413_v49 = vmul.f32 %v1409_v39, %v1399_v21  ;;  %v1492_v38 = vld [vmem:[#allocation6 + $0x20] ss:$8 sm:$0x3]  ;;  %v3582_v39 = vsel %vm1666_vm5, %v3521_v17, %v3519_v16 }
 0x52e   : > { %v1740_v41 = vrot.slane %v1724_v58, %v3201_v8  ;;  %v3601_v21 = vsel %vm1729_vm6, %v3523_v18, %v3525_v19  ;;  %v2601_v29 = vpack.c.bf16 %v1775_v37, %v1774_v36  ;;  %v1844_v18 = vld [vmem:[#allocation6 + $0x31] ss:$8 sm:$0x3]  ;;  %v1681_v19 = vmul.f32 %v1677_v4, %v3582_v39 }
 0x52f   : > { %1364 = vst [vmem:[#allocation2] sm:$0xcc] %v1362_v47  ;;  %v2592_v23 = vpack.c.bf16 %v1413_v49, %v1412_v48  ;;  %v1310_v53 = vpop.permute.xlu1 %1309  ;;  %v1308_v54 = vpop.permute.xlu0 %1307  ;;  %v1503_v47 = vrot.slane %v1492_v38, %v3199_v7  ;;  %v1507_v48 = vrot.slane %v1492_v38, %v3201_v8  ;;  %v1463_v49 = vld [vmem:[#allocation6 + $0x17] ss:$8 sm:$0x3]  ;;  %v1743_v52 = vmul.f32 %v1736_v14, %v3601_v21 }
 0x530   : > { %v1311_v56 = vsel %vm954_vm13, %v1308_v54, %v1310_v53  ;;  %v1312_v57 = vsel %vm954_vm13, %v1310_v53, %v1308_v54  ;;  %v1744_v22 = vmul.f32 %v1740_v41, %v3595_v20  ;;  %v1853_v62 = vrot.slane %v1844_v18, %v3201_v8 }
 0x531   : > { %v1421_v59 = vrot.slane %v2592_v23, 6  ;;  %v1324_v60 = vmul.f32 %v1317_v46, %v1312_v57  ;;  %v1325_v24 = vmul.f32 %v1321_v28, %v1311_v56  ;;  %v2599_v28 = vpack.c.bf16 %v1712_v35, %v1711_v15 }
 0x532   : > { %v1474_v57 = vrot.slane %v1463_v49, %v3199_v7  ;;  %v1783_v4 = vrot.slane %v2601_v29, 6  ;;  %v2598_v0 = vpack.c.bf16 %v1681_v19, %v1680_v50  ;;  %v2600_v11 = vpack.c.bf16 %v1744_v22, %v1743_v52 }
 0x533   : > { %1423 = vst [vmem:[#allocation2 + $0x8] sm:$0xcc] %v1421_v59  ;;  %v2589_v30 = vpack.c.bf16 %v1325_v24, %v1324_v60  ;;  %v1369_v31 = vpop.permute.xlu1 %1368  ;;  %v1367_v9 = vpop.permute.xlu0 %1366  ;;  %v1478_v60 = vrot.slane %v1463_v49, %v3201_v8  ;;  %v1522_v24 = vld [vmem:[#allocation6 + $0x21] ss:$8 sm:$0x3]  ;;  %v1720_v63 = vrot.slane %v2599_v28, 6  ;;  %v1857_v41 = vmul.f32 %v1853_v62, %v3562_v10 }
 0x534   : > { %v1370_v32 = vsel %vm1017_vm14, %v1367_v9, %v1369_v31  ;;  %v1371_v26 = vsel %vm1017_vm14, %v1369_v31, %v1367_v9 }
 0x535   : > { %1334 = vst [vmem:[#allocation2] sm:$0x33] %v2589_v30  ;;  %v1383_v27 = vmul.f32 %v1376_v51, %v1371_v26  ;;  %v1384_v33 = vmul.f32 %v1380_v25, %v1370_v32  ;;  %v1849_v25 = vrot.slane %v1844_v18, %v3199_v7 }
 0x537   : > { %v2591_v42 = vpack.c.bf16 %v1384_v33, %v1383_v27  ;;  %v1437_v43 = vpop.permute.xlu1 %1436  ;;  %v1435_v44 = vpop.permute.xlu0 %1434  ;;  %v1856_v38 = vmul.f32 %v1849_v25, %v3555_v61 }
 0x538   : > { %v1438_v16 = vsel %vm1081_vm15, %v1435_v44, %v1437_v43  ;;  %v1439_v17 = vsel %vm1081_vm15, %v1437_v43, %v1435_v44  ;;  %v1825_v43 = vrot.slane %v1820_v5, %v3199_v7  ;;  %v1829_v44 = vrot.slane %v1820_v5, %v3201_v8 }
 0x539   : > { %1393 = vst [vmem:[#allocation2 + $0x8] sm:$0x33] %v2591_v42  ;;  %v1451_v45 = vmul.f32 %v1444_v34, %v1438_v16  ;;  %v1452_v46 = vmul.f32 %v1448_v13, %v1439_v17  ;;  %v1533_v34 = vrot.slane %v1522_v24, %v3199_v7  ;;  %v1537_v13 = vrot.slane %v1522_v24, %v3201_v8  ;;  %v1788_v42 = vld [vmem:[#allocation6 + $0x27] ss:$8 sm:$0x3] }
 0x53a   : > { %v1869_v16 = vld [vmem:[#allocation6 + $0x32] ss:$8 sm:$0x3]  ;;  %v1800_v49 = vrot.slane %v1788_v42, %v3199_v7  ;;  %v1804_v28 = vrot.slane %v1788_v42, %v3201_v8  ;;  %v2604_v29 = vpack.c.bf16 %v1857_v41, %v1856_v38  ;;  %v1832_v18 = vmul.f32 %v1825_v43, %v3582_v39 }
 0x53b   : > { %v2594_v23 = vpack.c.bf16 %v1452_v46, %v1451_v45  ;;  %v1496_v53 = vpop.permute.xlu1 %1495  ;;  %v1494_v54 = vpop.permute.xlu0 %1493  ;;  %v1874_v50 = vrot.slane %v1869_v16, %v3199_v7  ;;  %v1833_v19 = vmul.f32 %v1829_v44, %v3588_v40  ;;  %v1878_v52 = vrot.slane %v1869_v16, %v3201_v8 }
 0x53c   : > { %v1497_v55 = vsel %vm1144_vm0, %v1494_v54, %v1496_v53  ;;  %v1498_v56 = vsel %vm1144_vm0, %v1496_v53, %v1494_v54  ;;  %v1551_v26 = vld [vmem:[#allocation2] sm:$0xff] }
 0x53d   : > { %v1460_v51 = vrot.slane %v2594_v23, 6  ;;  %v1510_v58 = vmul.f32 %v1503_v47, %v1497_v55  ;;  %v1511_v59 = vmul.f32 %v1507_v48, %v1498_v56  ;;  %v2603_v39 = vpack.c.bf16 %v1833_v19, %v1832_v18 }
 0x53e   : > { %v1881_v40 = vmul.f32 %v1874_v50, %v3595_v20 }
 0x53f   : > { %1462 = vst [vmem:[#allocation2 + $0x10] sm:$0xcc] %v1460_v51  ;;  %v2596_v30 = vpack.c.bf16 %v1511_v59, %v1510_v58  ;;  %v1467_v31 = vpop.permute.xlu1 %1466  ;;  %v1465_v9 = vpop.permute.xlu0 %1464  ;;  %v1865_v59 = vrot.slane %v2604_v29, 6 }
 0x540   : > { %v1468_v14 = vsel %vm1113_vm1, %v1465_v9, %v1467_v31  ;;  %v1469_v32 = vsel %vm1113_vm1, %v1467_v31, %v1465_v9  ;;  %v1552_v27 = vld [vmem:[#allocation2 + $0x8] sm:$0xff] }
 0x541   : > { %v2724_v33 = vld [vmem:[#allocation2 + $0x4] ss:$8 sps:$4 sm:$0xff]   ;;  %v1519_v15 = vrot.slane %v2596_v30, 6  ;;  %v1481_v35 = vmul.f32 %v1474_v57, %v1468_v14  ;;  %v1482_v36 = vmul.f32 %v1478_v60, %v1469_v32  ;;  %v2516_v37 = vcombine.low %v1551_v26, %v1552_v27  ;;  %v1657_v27 = vld [vmem:[#allocation8 + $0x8] sm:$0x3] }
 0x542   : > { %1690 = vst [vmem:[#allocation2] sm:$0x33] %v2598_v0  ;;  %1722 = vst [vmem:[#allocation2] sm:$0xcc] %v1720_v63  ;;  %1590 = vmatprep.subr.bf16.mxu1 %v2724_v33  ;;  %v1882_v60 = vmul.f32 %v1878_v52, %v3601_v21  ;;  %v947_v33 = vld [vmem:[#allocation8 + $0x6] sm:$0x3] }
 0x543   : > { %1753 = vst [vmem:[#allocation2 + $0x8] sm:$0x33] %v2600_v11  ;;  %1785 = vst [vmem:[#allocation2 + $0x8] sm:$0xcc] %v1783_v4  ;;  %v2595_v17 = vpack.c.bf16 %v1482_v36, %v1481_v35  ;;  %v1526_v45 = vpop.permute.xlu1 %1525  ;;  %v1524_v46 = vpop.permute.xlu0 %1523  ;;  %1591 = vmatpush1.bf16.msra.mxu1 %v2516_v37 }
 0x544   : > { %1521 = vst [vmem:[#allocation2 + $0x18] sm:$0xcc] %v1519_v15  ;;  %v1527_v47 = vsel %vm1176_vm2, %v1524_v46, %v1526_v45  ;;  %v1528_v61 = vsel %vm1176_vm2, %v1526_v45, %v1524_v46  ;;  %v2605_v0 = vpack.c.bf16 %v1882_v60, %v1881_v40 }
 0x545   : > { %1491 = vst [vmem:[#allocation2 + $0x18] sm:$0x33] %v2595_v17  ;;  %v1540_v10 = vmul.f32 %v1533_v34, %v1527_v47  ;;  %v1541_v48 = vmul.f32 %v1537_v13, %v1528_v61 }
 0x546   : > { %v1553_v25 = vld [vmem:[#allocation2 + $0x10] sm:$0xff] }
 0x547   : > { %v2597_v22 = vpack.c.bf16 %v1541_v48, %v1540_v10  ;;  %v1792_v23 = vpop.permute.xlu1 %1791  ;;  %v1790_v53 = vpop.permute.xlu0 %1789 }
 0x548   : > { %v1794_v54 = vsel %vm1793_vm7, %v1790_v53, %v1792_v23  ;;  %v1795_v55 = vsel %vm1793_vm7, %v1792_v23, %v1790_v53  ;;  %v3670_v23 = vpop.f32.mrb[0].mxu1 }
 0x549   : > { %1550 = vst [vmem:[#allocation2 + $0x20] sm:$0x33] %v2597_v22  ;;  %v1807_v57 = vmul.f32 %v1800_v49, %v1794_v54  ;;  %v1808_v51 = vmul.f32 %v1804_v28, %v1795_v55  ;;  %v924_v53 = vmul.f32 %v3670_v23, %v3670_v23  ;;  %v3674_v54 = vpop.f32.mrb[1].mxu1  ;;  %v919_v55 = vsel %vm568_vm10, %v3670_v23, 0.0 }
 0x54a   : > { %v2726_v56 = vld [vmem:[#allocation2 + $0x4] ss:$8 sps:$4 sm:$0xff]   ;;  %v2728_v58 = vld [vmem:[#allocation2] ss:$8 sps:$4 sm:$0xff]  }
 0x54b   : > { %1931 = vmatprep.subr.bf16.mxu0 %v2726_v56  ;;  %v2602_v24 = vpack.c.bf16 %v1808_v51, %v1807_v57  ;;  %v925_v56 = vmul.f32 %v3674_v54, %v3674_v54  ;;  %v916_v57 = vpop.f32.mrb[2].mxu1  ;;  %v920_v51 = vsel %vm568_vm10, %v3674_v54, 0.0 }
 0x54c   : > { %1932 = vmatpush1.bf16.msra.mxu0 %v2728_v58  ;;  %v1554_v62 = vld [vmem:[#allocation2 + $0x18] sm:$0xff]  ;;  %v917_v58 = vpop.f32.mrb[3].mxu1 }
 0x54d   : > { %v2729_v63 = vld [vmem:[#allocation2 + $0x14] ss:$8 sps:$4 sm:$0xff]   ;;  %v1816_v4 = vrot.slane %v2602_v24, 6  ;;  %v2518_v5 = vcombine.low %v1553_v25, %v1554_v62  ;;  %v927_v60 = vsel %vm568_vm10, %v925_v56, 0.0 }
 0x54e   : > { %1786 = vst [vmem:[#allocation2 + $0x10] sm:$0x33] %v3168_v2  ;;  %1842 = vst [vmem:[#allocation2 + $0x18] sm:$0x33] %v2603_v39  ;;  %1592 = vmatprep.subr.bf16.mxu1 %v2729_v63  ;;  %v926_v39 = vsel %vm568_vm10, %v924_v53, 0.0 }
 0x54f   : > { %1867 = vst [vmem:[#allocation2 + $0x18] sm:$0xcc] %v1865_v59  ;;  %1818 = vst [vmem:[#allocation2 + $0x10] sm:$0xcc] %v1816_v4  ;;  %1593 = vmatpush1.bf16.msra.mxu1 %v2518_v5  ;;  %v921_v59 = vadd.f32 %v920_v51, %v919_v55  ;;  %v928_v62 = vadd.f32 %v927_v60, %v926_v39 }
 0x550   : > { %v1555_v11 = vld [vmem:[#allocation2 + $0x20] sm:$0x33] }
 0x551   : > { %v2521_v30 = vcombine.high %v1555_v11, %v1555_v11  ;;  %1891 = vst [vmem:[#allocation2 + $0x20] sm:$0x33] %v2605_v0  ;;  %v2520_v20 = vcombine.low %v1555_v11, %v1555_v11 }
 0x553   : > { %2522 = vmatprep.subr.msk.bf16.mxu1 %vm520_vm8, %v2521_v30  ;;  %v1585_v21 = vsel %vm520_vm8, %v2520_v20, 0 }
 0x554   : > { %1595 = vmatpush1.bf16.msra.mxu1 %v1585_v21 }
 0x556   : > { %v2732_v31 = vld [vmem:[#allocation2 + $0x14] ss:$8 sps:$4 sm:$0xff]   ;;  %v2734_v9 = vld [vmem:[#allocation2 + $0x10] ss:$8 sps:$4 sm:$0xff]  }
 0x557   : > { %1933 = vmatprep.subr.bf16.mxu0 %v2732_v31  ;;  %2523 = vmatmul.mubr.msk.bf16.vlgmr.msra.gmra.mrb[4].mxu1 %vm516_vm9, %v947_v33  ;;  %v2085_v33 = vld [vmem:[#allocation6 + $0x25] ss:$8 sm:$0x3] }
 0x558   : > { %v1896_v2 = vld [vmem:[#allocation2 + $0x20] sm:$0x33]  ;;  %1934 = vmatpush1.bf16.msra.mxu0 %v2734_v9  ;;  %2295 = vmatprep.mubr.bf16.mxu1 %v2931_v3  ;;  %v2026_v9 = vld [vmem:[#allocation6 + $0x23] ss:$8 sm:$0x3] }
 0x559   : > { %v2537_v14 = vcombine.high %v1896_v2, %v1896_v2  ;;  %v2536_v32 = vcombine.low %v1896_v2, %v1896_v2  ;;  %v2177_v2 = vld [vmem:[#allocation6 + $0x31] ss:$8 sm:$0x3] }
 0x55b   : > { %2538 = vmatprep.subr.msk.bf16.mxu0 %vm520_vm8, %v2537_v14  ;;  %v1926_v26 = vsel %vm520_vm8, %v2536_v32, 0  ;;  %v2037_v14 = vrot.slane %v2026_v9, %v3199_v7  ;;  %v2041_v32 = vrot.slane %v2026_v9, %v3201_v8 }
 0x55c   : > { %1936 = vmatpush1.bf16.msra.mxu0 %v1926_v26  ;;  %v2182_v26 = vrot.slane %v2177_v2, %v3199_v7 }
 0x55f   : > { %2539 = vmatmul.mubr.msk.bf16.vlgmr.msra.gmra.mrb[8].mxu0 %vm516_vm9, %v1657_v27  ;;  %v2186_v27 = vrot.slane %v2177_v2, %v3201_v8 }
 0x62a   : > { %v3683_v40 = vpop.f32.mrb[4].mxu1 }
 0x62b   : > { %v1636_v24 = vmul.f32 %v3683_v40, %v3683_v40  ;;  %v3688_v25 = vpop.f32.mrb[5].mxu1  ;;  %v1631_v63 = vsel %vm568_vm10, %v3683_v40, 0.0 }
 0x62c   : > { %v1637_v4 = vmul.f32 %v3688_v25, %v3688_v25  ;;  %v1632_v5 = vsel %vm568_vm10, %v3688_v25, 0.0  ;;  %v1628_v0 = vpop.f32.mrb[6].mxu1 }
 0x62d   : > { %v1633_v11 = vadd.f32 %v1632_v5, %v1631_v63  ;;  %v1638_v30 = vsel %vm568_vm10, %v1636_v24, 0.0  ;;  %v1629_v20 = vpop.f32.mrb[7].mxu1  ;;  %v2124_v24 = vld [vmem:[#allocation6 + $0x27] ss:$8 sm:$0x3] }
 0x62e   : > { %v1639_v21 = vsel %vm568_vm10, %v1637_v4, 0.0 }
 0x62f   : > { %v1640_v31 = vadd.f32 %v1639_v21, %v1638_v30  ;;  %v2135_v21 = vrot.slane %v2124_v24, %v3199_v7 }
 0x632   : > { %v1965_v34 = vpop.f32.mrb[8].mxu0 }
 0x633   : > { %v1977_v13 = vmul.f32 %v1965_v34, %v1965_v34  ;;  %v1967_v15 = vpop.f32.mrb[9].mxu0  ;;  %v1972_v35 = vsel %vm568_vm10, %v1965_v34, 0.0 }
 0x634   : > { %v1978_v36 = vmul.f32 %v1967_v15, %v1967_v15  ;;  %v1969_v37 = vpop.f32.mrb[10].mxu0  ;;  %v1973_v38 = vsel %vm568_vm10, %v1967_v15, 0.0 }
 0x635   : > { %v1970_v41 = vpop.f32.mrb[11].mxu0  ;;  %v1974_v42 = vadd.f32 %v1973_v38, %v1972_v35  ;;  %v1979_v43 = vsel %vm568_vm10, %v1977_v13, 0.0  ;;  %v2100_v37 = vrot.slane %v2085_v33, %v3201_v8  ;;  %v1997_v38 = vld [vmem:[#allocation6 + $0x22] ss:$8 sm:$0x3] }
 0x636   : > { %v1980_v44 = vsel %vm568_vm10, %v1978_v36, 0.0  ;;  %v2096_v36 = vrot.slane %v2085_v33, %v3199_v7 }
 0x637   : > { %1975 = vadd.xlane.f32.xlu0 %v1974_v42  ;;  %v1981_v16 = vadd.f32 %v1980_v44, %v1979_v43 }
 0x639   : > { %1982 = vadd.xlane.f32.xlu1 %v1981_v16  ;;  %v2154_v16 = vld [vmem:[#allocation6 + $0x30] ss:$8 sm:$0x3] }
 0x6c4   : > { %v1976_v17 = vpop.xlane.xlu0 %1975 }
 0x6c5   : > { %v1984_v3 = vmul.f32 0.00390625, %v1976_v17 }
 0x6c6   : > { %v1983_v45 = vpop.xlane.xlu1 %1982 }
 0x6c7   : > { %v1985_v46 = vmul.f32 0.00390625, %v1983_v45  ;;  %v1986_v47 = vmul.f32 %v1984_v3, %v1984_v3  ;;  %v1989_v49 = vsub.f32 %v1965_v34, %v1984_v3  ;;  %v1990_v28 = vsub.f32 %v1967_v15, %v1984_v3 }
 0x6c9   : > { %v1987_v61 = vsub.f32 %v1985_v46, %v1986_v47  ;;  %v2008_v47 = vrot.slane %v1997_v38, %v3199_v7 }
 0x6cb   : > { %v1988_v10 = vmax.f32 %v1987_v61, 0.0 }
 0x6cd   : > { %v1991_v48 = vadd.f32 1e-05, %v1988_v10 }
 0x6cf   : > { %2749 = vrsqrt.f32 %v1991_v48  ;;  %v2012_v48 = vrot.slane %v1997_v38, %v3201_v8 }
 0x6d9   : > { %v2750_v29 = vpop.eup %2749 }
 0x6da   : > { %v1993_v50 = vmul.f32 %v2750_v29, %v1989_v49  ;;  %v1994_v18 = vmul.f32 %v2750_v29, %v1990_v28  ;;  %v2159_v49 = vrot.slane %v2154_v16, %v3199_v7  ;;  %v2056_v28 = vld [vmem:[#allocation6 + $0x24] ss:$8 sm:$0x3] }
 0x6db   : > { %v2067_v57 = vrot.slane %v2056_v28, %v3199_v7  ;;  %v2071_v51 = vrot.slane %v2056_v28, %v3201_v8 }
 0x6dc   : > { %v1995_v19 = vmax.f32 %v1993_v50, 0.0  ;;  %v1996_v52 = vmax.f32 %v1994_v18, 0.0 }
 0x6de   : > { %v2610_v22 = vpack.c.bf16 %v1996_v52, %v1995_v19  ;;  %2029 = vrot.lane.b32.xlu1 %v1996_v52, %s2940_s24  ;;  %2027 = vrot.lane.b32.xlu0 %v1995_v19, %s2940_s24 }
 0x6e0   : > { %2123 = vst [vmem:[#allocation2 + $0x10] sm:$0x33] %v2610_v22  ;;  %v2163_v22 = vrot.slane %v2154_v16, %v3201_v8 }
 0x6e2   : > { %2088 = vrot.lane.b32.xlu1 %v1996_v52, %s2941_s18  ;;  %2086 = vrot.lane.b32.xlu0 %v1995_v19, %s2941_s18 }
 0x6e6   : > { %2000 = vrot.lane.b32.xlu1 %v1996_v52, %s2942_s27  ;;  %1998 = vrot.lane.b32.xlu0 %v1995_v19, %s2942_s27 }
 0x6ea   : > { %2059 = vrot.lane.b32.xlu1 %v1996_v52, %s2943_s28  ;;  %2057 = vrot.lane.b32.xlu0 %v1995_v19, %s2943_s28 }
 0x6ee   : > { %2127 = vrot.lane.b32.xlu1 %v1996_v52, %s2944_s22  ;;  %2125 = vrot.lane.b32.xlu0 %v1995_v19, %s2944_s22  ;;  %v2201_v52 = vld [vmem:[#allocation6 + $0x32] ss:$8 sm:$0x3] }
 0x6ef   : > { %v2206_v39 = vrot.slane %v2201_v52, %v3199_v7  ;;  %v2210_v60 = vrot.slane %v2201_v52, %v3201_v8 }
 0x70d   : > { %922 = vadd.xlane.f32.xlu0 %v921_v59 }
 0x711   : > { %929 = vadd.xlane.f32.xlu0 %v928_v62 }
 0x712   : > { %1634 = vadd.xlane.f32.xlu1 %v1633_v11 }
 0x715   : > { %1641 = vadd.xlane.f32.xlu0 %v1640_v31 }
 0x750   : > { %v2030_v34 = vpop.permute.xlu1 %2029  ;;  %v2028_v13 = vpop.permute.xlu0 %2027 }
 0x751   : > { %v2031_v15 = vsel %vm1697_vm3, %v2028_v13, %v2030_v34  ;;  %v2032_v35 = vsel %vm1697_vm3, %v2030_v34, %v2028_v13 }
 0x752   : > { %v2044_v41 = vmul.f32 %v2037_v14, %v2032_v35  ;;  %v2045_v42 = vmul.f32 %v2041_v32, %v2031_v15  ;;  %v2189_v43 = vmul.f32 %v2182_v26, %v2031_v15  ;;  %v2190_v44 = vmul.f32 %v2186_v27, %v2032_v35 }
 0x753   : > { %v2139_v14 = vrot.slane %v2124_v24, %v3201_v8 }
 0x754   : > { %v2607_v17 = vpack.c.bf16 %v2045_v42, %v2044_v41  ;;  %v2613_v3 = vpack.c.bf16 %v2190_v44, %v2189_v43  ;;  %v2089_v45 = vpop.permute.xlu1 %2088  ;;  %v2087_v46 = vpop.permute.xlu0 %2086 }
 0x755   : > { %v2090_v61 = vsel %vm1760_vm4, %v2087_v46, %v2089_v45  ;;  %v2091_v10 = vsel %vm1760_vm4, %v2089_v45, %v2087_v46  ;;  %v1659_v46 = vld [vmem:[#allocation8 + $0xa] sm:$0x3] }
 0x756   : > { %v2053_v29 = vrot.slane %v2607_v17, 6  ;;  %v2198_v50 = vrot.slane %v2613_v3, 6  ;;  %v2103_v18 = vmul.f32 %v2096_v36, %v2091_v10  ;;  %v2104_v19 = vmul.f32 %v2100_v37, %v2090_v61 }
 0x758   : > { %2055 = vst [vmem:[#allocation2] sm:$0xcc] %v2053_v29  ;;  %2200 = vst [vmem:[#allocation2 + $0x18] sm:$0xcc] %v2198_v50  ;;  %v2609_v53 = vpack.c.bf16 %v2104_v19, %v2103_v18  ;;  %v2001_v55 = vpop.permute.xlu1 %2000  ;;  %v1999_v56 = vpop.permute.xlu0 %1998 }
 0x759   : > { %v2002_v58 = vsel %vm1666_vm5, %v1999_v56, %v2001_v55  ;;  %v2003_v59 = vsel %vm1666_vm5, %v2001_v55, %v1999_v56 }
 0x75a   : > { %v2112_v62 = vrot.slane %v2609_v53, 6  ;;  %v2015_v63 = vmul.f32 %v2008_v47, %v2003_v59  ;;  %v2016_v4 = vmul.f32 %v2012_v48, %v2002_v58  ;;  %v2166_v5 = vmul.f32 %v2159_v49, %v2002_v58 }
 0x75b   : > { %v2167_v0 = vmul.f32 %v2163_v22, %v2003_v59 }
 0x75c   : > { %2114 = vst [vmem:[#allocation2 + $0x8] sm:$0xcc] %v2112_v62  ;;  %v2606_v11 = vpack.c.bf16 %v2016_v4, %v2015_v63  ;;  %v2060_v30 = vpop.permute.xlu1 %2059  ;;  %v2058_v20 = vpop.permute.xlu0 %2057 }
 0x75d   : > { %v2612_v31 = vpack.c.bf16 %v2167_v0, %v2166_v5  ;;  %v2061_v9 = vsel %vm1729_vm6, %v2058_v20, %v2060_v30  ;;  %v2062_v2 = vsel %vm1729_vm6, %v2060_v30, %v2058_v20 }
 0x75e   : > { %2025 = vst [vmem:[#allocation2] sm:$0x33] %v2606_v11  ;;  %v2074_v32 = vmul.f32 %v2067_v57, %v2062_v2  ;;  %v2075_v26 = vmul.f32 %v2071_v51, %v2061_v9  ;;  %v2213_v27 = vmul.f32 %v2206_v39, %v2061_v9  ;;  %v2214_v33 = vmul.f32 %v2210_v60, %v2062_v2 }
 0x75f   : > { %2176 = vst [vmem:[#allocation2 + $0x18] sm:$0x33] %v2612_v31 }
 0x760   : > { %v2608_v34 = vpack.c.bf16 %v2075_v26, %v2074_v32  ;;  %v2614_v13 = vpack.c.bf16 %v2214_v33, %v2213_v27  ;;  %v2128_v15 = vpop.permute.xlu1 %2127  ;;  %v2126_v35 = vpop.permute.xlu0 %2125 }
 0x761   : > { %v2129_v7 = vsel %vm1793_vm7, %v2126_v35, %v2128_v15  ;;  %v2130_v36 = vsel %vm1793_vm7, %v2128_v15, %v2126_v35 }
 0x762   : > { %2084 = vst [vmem:[#allocation2 + $0x8] sm:$0x33] %v2608_v34  ;;  %2223 = vst [vmem:[#allocation2 + $0x20] sm:$0x33] %v2614_v13  ;;  %v2142_v37 = vmul.f32 %v2135_v21, %v2129_v7  ;;  %v2143_v8 = vmul.f32 %v2139_v14, %v2130_v36 }
 0x764   : > { %v2611_v38 = vpack.c.bf16 %v2143_v8, %v2142_v37 }
 0x766   : > { %v2151_v41 = vrot.slane %v2611_v38, 6 }
 0x768   : > { %2153 = vst [vmem:[#allocation2 + $0x10] sm:$0xcc] %v2151_v41 }
 0x769   : > { %v2737_v42 = vld [vmem:[#allocation2] ss:$8 sps:$4 sm:$0xff]   ;;  %v2739_v43 = vld [vmem:[#allocation2 + $0x4] ss:$8 sps:$4 sm:$0xff]  }
 0x76a   : > { %2263 = vmatprep.subr.bf16.mxu1 %v2739_v43  ;;  %v2228_v44 = vld [vmem:[#allocation2 + $0x20] sm:$0x33] }
 0x76b   : > { %2264 = vmatpush1.bf16.msra.mxu1 %v2737_v42  ;;  %v2554_v3 = vcombine.high %v2228_v44, %v2228_v44  ;;  %v2553_v45 = vcombine.low %v2228_v44, %v2228_v44 }
 0x76d   : > { %v2258_v6 = vsel %vm520_vm8, %v2553_v45, 0 }
 0x76f   : > { %v2740_v16 = vld [vmem:[#allocation2 + $0x10] ss:$8 sps:$4 sm:$0xff]   ;;  %v2742_v17 = vld [vmem:[#allocation2 + $0x14] ss:$8 sps:$4 sm:$0xff]  }
 0x770   : > { %2265 = vmatprep.subr.bf16.mxu1 %v2742_v17 }
 0x771   : > { %2266 = vmatpush1.bf16.msra.mxu1 %v2740_v16 }
 0x772   : > { %2555 = vmatprep.subr.msk.bf16.mxu1 %vm520_vm8, %v2554_v3 }
 0x775   : > { %2268 = vmatpush1.bf16.msra.mxu1 %v2258_v6 }
 0x778   : > { %2556 = vmatmul.mubr.msk.bf16.vlgmr.msra.gmra.mrb[8].mxu1 %vm516_vm9, %v1659_v46 }
 0x79a   : > { %v923_v47 = vpop.xlane.xlu0 %922 }
 0x79b   : > { %v931_v61 = vmul.f32 0.00390625, %v923_v47 }
 0x79d   : > { %v933_v10 = vmul.f32 %v931_v61, %v931_v61  ;;  %v936_v51 = vsub.f32 %v3670_v23, %v931_v61  ;;  %v937_v58 = vsub.f32 %v3674_v54, %v931_v61 }
 0x79e   : > { %v930_v48 = vpop.xlane.xlu0 %929 }
 0x79f   : > { %v932_v49 = vmul.f32 0.00390625, %v930_v48  ;;  %v1635_v28 = vpop.xlane.xlu1 %1634 }
 0x7a0   : > { %v1643_v29 = vmul.f32 0.00390625, %v1635_v28 }
 0x7a1   : > { %v934_v50 = vsub.f32 %v932_v49, %v933_v10 }
 0x7a2   : > { %v1645_v18 = vmul.f32 %v1643_v29, %v1643_v29  ;;  %v1642_v19 = vpop.xlane.xlu0 %1641  ;;  %v1648_v39 = vsub.f32 %v3683_v40, %v1643_v29  ;;  %v1649_v60 = vsub.f32 %v3688_v25, %v1643_v29 }
 0x7a3   : > { %v935_v52 = vmax.f32 %v934_v50, 0.0  ;;  %v1644_v22 = vmul.f32 0.00390625, %v1642_v19 }
 0x7a5   : > { %v938_v53 = vadd.f32 1e-05, %v935_v52  ;;  %v1646_v55 = vsub.f32 %v1644_v22, %v1645_v18 }
 0x7a7   : > { %2751 = vrsqrt.f32 %v938_v53  ;;  %v1647_v56 = vmax.f32 %v1646_v55, 0.0 }
 0x7a9   : > { %v1650_v57 = vadd.f32 1e-05, %v1647_v56 }
 0x7ab   : > { %2753 = vrsqrt.f32 %v1650_v57 }
 0x7b1   : > { %v2752_v59 = vpop.eup %2751 }
 0x7b2   : > { %v940_v24 = vmul.f32 %v2752_v59, %v936_v51  ;;  %v941_v62 = vmul.f32 %v2752_v59, %v937_v58 }
 0x7b5   : > { %v2754_v63 = vpop.eup %2753 }
 0x7b6   : > { %v1652_v4 = vmul.f32 %v2754_v63, %v1648_v39  ;;  %v1653_v5 = vmul.f32 %v2754_v63, %v1649_v60 }
 0x7b8   : > { %v1654_v0 = vadd.f32 %v1652_v4, %v940_v24  ;;  %v1655_v11 = vadd.f32 %v1653_v5, %v941_v62 }
 0x84b   : > { %v2297_v30 = vpop.f32.mrb[8].mxu1 }
 0x84c   : > { %v2309_v20 = vmul.f32 %v2297_v30, %v2297_v30  ;;  %v2299_v21 = vpop.f32.mrb[9].mxu1  ;;  %v2304_v31 = vsel %vm568_vm10, %v2297_v30, 0.0 }
 0x84d   : > { %v2310_v23 = vmul.f32 %v2299_v21, %v2299_v21  ;;  %v2301_v9 = vpop.f32.mrb[10].mxu1  ;;  %v2305_v54 = vsel %vm568_vm10, %v2299_v21, 0.0 }
 0x84e   : > { %v2302_v2 = vpop.f32.mrb[11].mxu1  ;;  %v2306_v40 = vadd.f32 %v2305_v54, %v2304_v31  ;;  %v2311_v25 = vsel %vm568_vm10, %v2309_v20, 0.0 }
 0x84f   : > { %v2312_v14 = vsel %vm568_vm10, %v2310_v23, 0.0 }
 0x850   : > { %2307 = vadd.xlane.f32.xlu1 %v2306_v40  ;;  %v2313_v32 = vadd.f32 %v2312_v14, %v2311_v25 }
 0x852   : > { %2314 = vadd.xlane.f32.xlu0 %v2313_v32 }
 0x8dd   : > { %v2308_v26 = vpop.xlane.xlu1 %2307 }
 0x8de   : > { %v2316_v27 = vmul.f32 0.00390625, %v2308_v26 }
 0x8df   : > { %v2315_v33 = vpop.xlane.xlu0 %2314 }
 0x8e0   : > { %v2317_v34 = vmul.f32 0.00390625, %v2315_v33  ;;  %v2318_v13 = vmul.f32 %v2316_v27, %v2316_v27  ;;  %v2321_v36 = vsub.f32 %v2297_v30, %v2316_v27  ;;  %v2322_v37 = vsub.f32 %v2299_v21, %v2316_v27 }
 0x8e2   : > { %v2319_v15 = vsub.f32 %v2317_v34, %v2318_v13 }
 0x8e4   : > { %v2320_v35 = vmax.f32 %v2319_v15, 0.0 }
 0x8e6   : > { %v2323_v7 = vadd.f32 1e-05, %v2320_v35 }
 0x8e8   : > { %2755 = vrsqrt.f32 %v2323_v7 }
 0x8f2   : > { %v2756_v8 = vpop.eup %2755 }
 0x8f3   : > { %v2325_v38 = vmul.f32 %v2756_v8, %v2321_v36  ;;  %v2326_v41 = vmul.f32 %v2756_v8, %v2322_v37 }
 0x8f5   : > { %v2327_v42 = vadd.f32 %v2325_v38, %v1654_v0  ;;  %v2328_v43 = vadd.f32 %v2326_v41, %v1655_v11 }
 0x8f7   : > { %v2329_v44 = vmul.f32 0.33333334, %v2327_v42  ;;  %v2330_v16 = vmul.f32 0.33333334, %v2328_v43 }
 0x8f9   : > { %v2331_v17 = vadd.f32 %v3515_v12, %v2329_v44  ;;  %v2332_v3 = vadd.f32 %v2330_v16, %v3160_v1 }
 0x8fb   : > { %v2333_v45 = vmax.f32 %v2331_v17, 0.0  ;;  %v2334_v6 = vmax.f32 %v2332_v3, 0.0 }
 0x8fd   : > { %v2337_v46 = vcombine.low %v2333_v45, %v2334_v6 }
 0x8ff   : > { %2339 = vst [vmem:[%s215_s4] sm:$0xff] %v2337_v46 }
 0x900   : > { %2857 = shalt.err (!%p2854_p2)
}
 0x901   : > { %s2858_s21 = scalar_lea.hbm %s3753_s23, 128  ;;  %s2862_s24 = scalar_lea.hbm %s3800_s3, 256 }
 0x902   : > { %p2859_p13 = scmp.ne.s32.totalorder %s3753_s23, %s2858_s21  ;;  %p2863_p4 = scmp.lt.u32.totalorder %s3753_s23, %s3800_s3 }
 0x903   : > { %p2864_p7 = scmp.lt.u32.totalorder %s2862_s24, %s2858_s21  ;;  %p2866_p11 = scmp.lt.u32.totalorder %s2858_s21, %s3753_s23 }
 0x904   : > { %p2860_p6 = pnand %p2859_p13, %p3814_p0 }
 0x905   : > { %p2865_p8 = por %p2864_p7, %p2863_p4 }
 0x906   : > { %p2861_p10 = pneg %p2860_p6 }
 0x907   : > { %p2867_p1 = por %p2866_p11, %p2865_p8 }
 0x909   : > { %p2868_p3 = pnand %p2867_p1, %p2861_p10 }
 0x90b   : > { %2871 = shalt.err (!%p2868_p3)
}
 0x90c   : > { %2626 = dma.vmem_to_hbm [thread:$0]  (%p3814_p0), %s3755_s5, 128, %s3753_s23, %s2341_s11  }
 0x90d PF: > { %s2367_s28 = sand.u32 1, %s2902_s12   ;;  %p3815_p5 = scmp.ne.s32.totalorder %s3805_s19, 0 }
 0x90e   : > { %p3816_p9 = scmp.ge.s32.totalorder %s2914_s15, 2  ;;  %s2368_s22 = scalar_lea.sflag [#allocation5], %s2367_s28 }
 0x910   : > { %p2640_p12 = pnand %p3816_p9, %p3815_p5 }
 0x912   : > { %2897 = dma.done.wait (!%p2640_p12), %s2368_s22, 128  }
 0x913   : > { %2899 = vsyncadd (!%p2640_p12), %s2368_s22, 4294967168  ;;  %p17_p2 = scmp.ge.s32.totalorder %s3076_s6, 4   ;;  %s3817_s12 = smov %s2906_s13 }
 0x914   : > { %s3818_s13 = smov %s2910_s14  ;;  %s3819_s14 = smov %s3085_s9 }
 0x915   : > { %s3820_s15 = smov %s3076_s6  ;;  %19 = sbr.rel (!%p17_p2) target bundleno = 6 (0x6), region = 113 }
 0x91c   :  { %2373 = vsyncpa [#allocation4], 1 }
 0x91d   :  { %2375 = vsyncpa [#allocation4 + $0x1], 1 }
 0x91e   :  { %2376 = vsyncpa [#allocation7], 1 }
 0x91f   :  { %2377 = vsyncpa [#allocation5], 1 }
 0x920   :  { %2379 = vsyncpa [#allocation5 + $0x1], 1 }

</bundles_post_ra>
